<compile_context>
chip_gen: v6e
topology: v6e:2x2x1
jax: 0.10.0
libtpu: 0.0.40
codegen_flags: <defaults>
</compile_context>

<pallas_src>
import functools
import inspect
import math

import jax
import jax.numpy as jnp
from jax.experimental import pallas as pl
from jax.experimental.pallas import tpu as pltpu


try:
    _HAS_PIPELINE_MODE = (
        hasattr(pl, "Buffered")
        and "pipeline_mode" in inspect.signature(pl.BlockSpec).parameters)
except (TypeError, ValueError):  # pragma: no cover - very old JAX
    _HAS_PIPELINE_MODE = False


def _auto_gate_dtype():
    """bf16 gate epilogue on chips with a bf16 VPU/EUP (v6e, v7x); f32 else."""
    try:
        kind = jax.devices()[0].device_kind.lower()
    except Exception:
        return jnp.float32
    if ("v6" in kind) or ("v7" in kind):
        return jnp.bfloat16
    return jnp.float32  # v5e and earlier: no bf16 VPU/EUP -> keep f32


def _resident_spec(block_shape):
    """Constant-index BlockSpec: fetched HBM->VMEM once, resident across grid.

    Single-buffered (pl.Buffered(1)) when supported, since the block index
    never changes -- frees one weight-sized VMEM buffer (matters at large H
    and on v7x's 64 MiB VMEM)."""
    index_map = lambda i: (0,) * len(block_shape)
    if _HAS_PIPELINE_MODE:
        return pl.BlockSpec(block_shape, index_map,
                            pipeline_mode=pl.Buffered(1))
    return pl.BlockSpec(block_shape, index_map)


def _tree_lstm_kernel(children_ref, cl_ref, cr_ref, w_ref, b_ref,
                      h_out_ref, c_out_ref, *, gate_dtype):
    """Fused TreeLSTM cell for one batch tile.

    children    : (tb, 2H)  [h_l | h_r]         (f32 or bf16, matches weights)
    cl/cr       : (tb, H)   previous left/right cell states (f32)
    w           : (2H, 5H)  reduce_layer weight, pre-transposed, resident
    b           : (1, 5H)   reduce_layer bias (f32)
    h_out/c_out : (tb, H)
    """
    H = cl_ref.shape[1]
    f32 = jnp.float32

    # proj = [h_l | h_r] @ W^T + b : a single K=2H contraction, f32 MXU acc.
    proj = jnp.dot(children_ref[...], w_ref[...], preferred_element_type=f32)
    proj = proj + b_ref[...].astype(f32)

    # Gate nonlinearities (EUP). Slices are 128-lane aligned since H % 128 == 0.
    gates = proj.astype(gate_dtype)
    i_g = jax.nn.sigmoid(gates[:, 0 * H:1 * H])
    f_l = jax.nn.sigmoid(gates[:, 1 * H:2 * H])
    f_r = jax.nn.sigmoid(gates[:, 2 * H:3 * H])
    g_g = jnp.tanh(gates[:, 3 * H:4 * H])
    o_g = jax.nn.sigmoid(gates[:, 4 * H:5 * H])

    # Cell-state accumulation and outputs stay f32.
    c = (i_g.astype(f32) * g_g.astype(f32)
         + f_l.astype(f32) * cl_ref[...].astype(f32)
         + f_r.astype(f32) * cr_ref[...].astype(f32))
    h = o_g.astype(f32) * jnp.tanh(c.astype(gate_dtype)).astype(f32)

    h_out_ref[...] = h.astype(h_out_ref.dtype)
    c_out_ref[...] = c.astype(c_out_ref.dtype)


def prepare_tree_lstm_params(weight, bias, param_dtype=jnp.bfloat16):
    """One-time canonicalization of nn.Linear(2H, 5H) parameters.

    weight : (5H, 2H)  (PyTorch nn.Linear layout)
    bias   : (5H,)
    Returns (w_cat, b2) with shapes (2H, 5H) and (1, 5H).  bf16 weights are
    the default (halves the weight DMA; MXU accumulation stays f32).
    Do this ONCE at parameter-init time, not per tree node / per level.
    """
    w_cat = jnp.asarray(weight, dtype=jnp.float32).T.astype(param_dtype)
    b2 = jnp.asarray(bias, dtype=jnp.float32).reshape(1, -1)
    return w_cat, b2


@functools.partial(jax.jit, static_argnames=("block_b", "gate_dtype"))
def _tree_lstm_cell_impl(prev_h_l, prev_c_l, prev_h_r, prev_c_r, w_cat, b2,
                         *, block_b, gate_dtype):
    B, H = prev_h_l.shape
    if H % 128 != 0:
        raise ValueError(
            f"hidden_size must be a multiple of 128 (got {H}); otherwise the "
            "gate slices cross (8,128) tiles and force masked re-layout copies.")
    if w_cat.shape != (2 * H, 5 * H):
        raise ValueError(f"w_cat must have shape {(2*H, 5*H)}, got {w_cat.shape}")

    mm_dtype = w_cat.dtype
    f32 = jnp.float32

    # The same-depth gather writes children as one (B, 2H) slab (here: concat
    # in the wrapper, fused by XLA), cast to the matmul dtype.
    children = jnp.concatenate([prev_h_l, prev_h_r], axis=1).astype(mm_dtype)
    c_l = prev_c_l.astype(f32)
    c_r = prev_c_r.astype(f32)

    # ---- batch tile selection -------------------------------------------
    # Big tiles (amortize ~0.35us/step and fill the MXU M dim), multiple of 8
    # rows, and >=2 grid steps when the batch allows it (v7x: 2 TensorCores
    # sharded over the "parallel" axis).
    tb = max(8, min(block_b, B))
    tb = (tb // 8) * 8
    if pl.cdiv(B, tb) < 2 and B > 8:
        tb = max(8, ((pl.cdiv(B, 2) + 7) // 8) * 8)
    n_steps = pl.cdiv(B, tb)
    B_pad = n_steps * tb

    # Pad the batch up to a tile multiple instead of collapsing to one tile.
    if B_pad != B:
        pad = B_pad - B
        children = jnp.pad(children, ((0, pad), (0, 0)))
        c_l = jnp.pad(c_l, ((0, pad), (0, 0)))
        c_r = jnp.pad(c_r, ((0, pad), (0, 0)))

    # ---- specs -----------------------------------------------------------
    row_spec = pl.BlockSpec((tb, H), lambda i: (i, 0))
    child_spec = pl.BlockSpec((tb, 2 * H), lambda i: (i, 0))
    w_spec = _resident_spec((2 * H, 5 * H))   # resident, single-buffered
    b_spec = _resident_spec((1, 5 * H))

    # Explicit VMEM limit only when the footprint exceeds the 16 MiB default
    # scoped budget (v5e); capped below v7x's 64 MiB physical VMEM.
    w_bytes = 2 * H * 5 * H * jnp.dtype(mm_dtype).itemsize + 5 * H * 4
    row_bytes = 2 * (tb * 2 * H * jnp.dtype(mm_dtype).itemsize   # children (x2 buf)
                     + 4 * tb * H * 4)                           # cl, cr, h, c (x2 buf)
    est = int(1.5 * (w_bytes + row_bytes + tb * 5 * H * 4))      # + proj scratch
    cp_kwargs = dict(dimension_semantics=("parallel",))
    if est > 16 * 1024 * 1024:
        cp_kwargs["vmem_limit_bytes"] = int(min(2 * est, 56 * 1024 * 1024))

    kernel = functools.partial(_tree_lstm_kernel, gate_dtype=gate_dtype)

    h_out, c_out = pl.pallas_call(
        kernel,
        out_shape=(jax.ShapeDtypeStruct((B_pad, H), f32),
                   jax.ShapeDtypeStruct((B_pad, H), f32)),
        grid=(n_steps,),
        in_specs=[child_spec, row_spec, row_spec, w_spec, b_spec],
        out_specs=(row_spec, row_spec),
        compiler_params=pltpu.CompilerParams(**cp_kwargs),
    )(children, c_l, c_r, w_cat, b2)

    if B_pad != B:
        h_out = h_out[:B]
        c_out = c_out[:B]
    return h_out, c_out


def tree_lstm_cell(prev_h_l, prev_c_l, prev_h_r, prev_c_r, w_cat, b2,
                   *, block_b=256, gate_dtype=None):
    """Batched TreeLSTM cell.  Gather all same-depth tree nodes into one
    (B, H) batch per call so the resident-weight DMA is amortized.

    prev_*  : (B, H)
    w_cat   : (2H, 5H)  pre-transposed reduce_layer weight (f32/bf16)
    b2      : (1, 5H)   bias
    Returns (h, c), each (B, H) float32.
    """
    if gate_dtype is None:
        gate_dtype = _auto_gate_dtype()
    return _tree_lstm_cell_impl(prev_h_l, prev_c_l, prev_h_r, prev_c_r,
                                w_cat, b2, block_b=block_b,
                                gate_dtype=gate_dtype)


def tree_lstm_cell_ref(prev_h_l, prev_c_l, prev_h_r, prev_c_r, weight, bias):
    """Pure-JAX reference identical to the PyTorch forward (f32)."""
    children = jnp.concatenate([prev_h_l, prev_h_r], axis=1)
    proj = jnp.dot(children, weight.T,
                   preferred_element_type=jnp.float32) + bias
    i, f_l, f_r, g, o = jnp.split(proj, 5, axis=-1)
    i, f_l, f_r, o = map(jax.nn.sigmoid, (i, f_l, f_r, o))
    g = jnp.tanh(g)
    c = i * g + f_l * prev_c_l + f_r * prev_c_r
    h = o * jnp.tanh(c)
    return h, c


if __name__ == "__main__":
    # Small, TPU-friendly shapes.  H=128 keeps gate slices lane-aligned.
    # B=200 models a level's worth of same-depth tree nodes gathered into one
    # call, and is deliberately NOT a multiple of the tile so the padding +
    # multi-step parallel grid paths are exercised.
    B, H = 200, 128
    input_size = 128  # unused by forward(), kept for module parity

    key = jax.random.PRNGKey(0)
    k_hl, k_cl, k_hr, k_cr, k_w, k_b = jax.random.split(key, 6)

    prev_h_l = jax.random.normal(k_hl, (B, H), dtype=jnp.float32)
    prev_c_l = jax.random.normal(k_cl, (B, H), dtype=jnp.float32)
    prev_h_r = jax.random.normal(k_hr, (B, H), dtype=jnp.float32)
    prev_c_r = jax.random.normal(k_cr, (B, H), dtype=jnp.float32)

    # reset_parameters(): uniform(-stdv, stdv), stdv = 1/sqrt(hidden_size)
    stdv = 1.0 / math.sqrt(H)
    weight = jax.random.uniform(k_w, (5 * H, 2 * H), dtype=jnp.float32,
                                minval=-stdv, maxval=stdv)
    bias = jax.random.uniform(k_b, (5 * H,), dtype=jnp.float32,
                              minval=-stdv, maxval=stdv)

    h_ref, c_ref = tree_lstm_cell_ref(prev_h_l, prev_c_l, prev_h_r, prev_c_r,
                                      weight, bias)

    # --- f32 weights + f32 gates: tight correctness check ---
    w_cat32, b2 = prepare_tree_lstm_params(weight, bias, jnp.float32)
    h, c = tree_lstm_cell(prev_h_l, prev_c_l, prev_h_r, prev_c_r,
                          w_cat32, b2, gate_dtype=jnp.float32)
    jax.block_until_ready((h, c))
    assert h.shape == (B, H) and c.shape == (B, H)
    assert jnp.allclose(h, h_ref, atol=1e-4, rtol=1e-4)
    assert jnp.allclose(c, c_ref, atol=1e-4, rtol=1e-4)

    # --- default fast path: bf16 weights/activations, bf16 gate epilogue on
    #     v6e/v7x (auto), f32 accumulation everywhere: loose check vs f32 ref.
    w_cat16, b2_16 = prepare_tree_lstm_params(weight, bias)  # bf16 default
    h16, c16 = tree_lstm_cell(prev_h_l, prev_c_l, prev_h_r, prev_c_r,
                              w_cat16, b2_16)
    jax.block_until_ready((h16, c16))
    assert jnp.allclose(h16, h_ref, atol=1e-1)
    assert jnp.allclose(c16, c_ref, atol=1e-1)

    print("KERNEL_OK")
</pallas_src>

<mosaic_0001>
module attributes {stable_mosaic.version = 11 : i64} {
  func.func @_tree_lstm_kernel(%arg0: i32, %arg1: memref<104x256xf32, #tpu.memory_space<vmem>>, %arg2: memref<104x128xf32, #tpu.memory_space<vmem>>, %arg3: memref<104x128xf32, #tpu.memory_space<vmem>>, %arg4: memref<256x640xf32, #tpu.memory_space<vmem>>, %arg5: memref<1x640xf32, #tpu.memory_space<vmem>>, %arg6: memref<104x128xf32, #tpu.memory_space<vmem>>, %arg7: memref<104x128xf32, #tpu.memory_space<vmem>>) attributes {dimension_semantics = [#tpu.dimension_semantics<parallel>], iteration_bounds = array<i64: 2>, scalar_prefetch = 0 : i64, scratch_operands = 0 : i64, tpu.core_type = #tpu.core_type<tc>, window_params = [{transform_indices = @transform_0, window_bounds = array<i64: 104, 256>}, {transform_indices = @transform_1, window_bounds = array<i64: 104, 128>}, {transform_indices = @transform_2, window_bounds = array<i64: 104, 128>}, {pipeline_mode = #tpu.pipeline_mode<synchronous>, transform_indices = @transform_3, window_bounds = array<i64: 256, 640>}, {pipeline_mode = #tpu.pipeline_mode<synchronous>, transform_indices = @transform_4, window_bounds = array<i64: 1, 640>}, {transform_indices = @transform_5, window_bounds = array<i64: 104, 128>}, {transform_indices = @transform_6, window_bounds = array<i64: 104, 128>}]} {
    %c0 = arith.constant 0 : index
    %c0_0 = arith.constant 0 : index
    %0 = vector.load %arg1[%c0, %c0_0] : memref<104x256xf32, #tpu.memory_space<vmem>>, vector<104x256xf32>
    %c0_1 = arith.constant 0 : index
    %c0_2 = arith.constant 0 : index
    %1 = vector.load %arg4[%c0_1, %c0_2] : memref<256x640xf32, #tpu.memory_space<vmem>>, vector<256x640xf32>
    %cst = arith.constant dense<0.000000e+00> : vector<104x640xf32>
    %2 = tpu.matmul %0, %1, %cst {dimension_numbers = #tpu.dot_dimension_numbers<[1], [0], [0], [1], [0, 0, 1, 1], [], []>} : vector<104x256xf32>, vector<256x640xf32>, vector<104x640xf32> -> vector<104x640xf32>
    %c0_3 = arith.constant 0 : index
    %c0_4 = arith.constant 0 : index
    %3 = vector.load %arg5[%c0_3, %c0_4] : memref<1x640xf32, #tpu.memory_space<vmem>>, vector<1x640xf32>
    %4 = vector.broadcast %3 : vector<1x640xf32> to vector<104x640xf32>
    %5 = arith.addf %2, %4 : vector<104x640xf32>
    %6 = vector.extract_strided_slice %5 {offsets = [0, 0], sizes = [104, 128], strides = [1, 1]} : vector<104x640xf32> to vector<104x128xf32>
    %7 = arith.negf %6 : vector<104x128xf32>
    %8 = math.exp %7 : vector<104x128xf32>
    %cst_5 = arith.constant 1.000000e+00 : f32
    %9 = vector.broadcast %cst_5 : f32 to vector<104x128xf32>
    %10 = arith.addf %9, %8 : vector<104x128xf32>
    %11 = arith.divf %9, %10 : vector<104x128xf32>
    %12 = vector.extract_strided_slice %5 {offsets = [0, 128], sizes = [104, 128], strides = [1, 1]} : vector<104x640xf32> to vector<104x128xf32>
    %13 = arith.negf %12 : vector<104x128xf32>
    %14 = math.exp %13 : vector<104x128xf32>
    %cst_6 = arith.constant 1.000000e+00 : f32
    %15 = vector.broadcast %cst_6 : f32 to vector<104x128xf32>
    %16 = arith.addf %15, %14 : vector<104x128xf32>
    %17 = arith.divf %15, %16 : vector<104x128xf32>
    %18 = vector.extract_strided_slice %5 {offsets = [0, 256], sizes = [104, 128], strides = [1, 1]} : vector<104x640xf32> to vector<104x128xf32>
    %19 = arith.negf %18 : vector<104x128xf32>
    %20 = math.exp %19 : vector<104x128xf32>
    %cst_7 = arith.constant 1.000000e+00 : f32
    %21 = vector.broadcast %cst_7 : f32 to vector<104x128xf32>
    %22 = arith.addf %21, %20 : vector<104x128xf32>
    %23 = arith.divf %21, %22 : vector<104x128xf32>
    %24 = vector.extract_strided_slice %5 {offsets = [0, 384], sizes = [104, 128], strides = [1, 1]} : vector<104x640xf32> to vector<104x128xf32>
    %25 = math.tanh %24 : vector<104x128xf32>
    %26 = vector.extract_strided_slice %5 {offsets = [0, 512], sizes = [104, 128], strides = [1, 1]} : vector<104x640xf32> to vector<104x128xf32>
    %27 = arith.negf %26 : vector<104x128xf32>
    %28 = math.exp %27 : vector<104x128xf32>
    %cst_8 = arith.constant 1.000000e+00 : f32
    %29 = vector.broadcast %cst_8 : f32 to vector<104x128xf32>
    %30 = arith.addf %29, %28 : vector<104x128xf32>
    %31 = arith.divf %29, %30 : vector<104x128xf32>
    %32 = arith.mulf %11, %25 : vector<104x128xf32>
    %c0_9 = arith.constant 0 : index
    %c0_10 = arith.constant 0 : index
    %33 = vector.load %arg2[%c0_9, %c0_10] : memref<104x128xf32, #tpu.memory_space<vmem>>, vector<104x128xf32>
    %34 = arith.mulf %17, %33 : vector<104x128xf32>
    %35 = arith.addf %32, %34 : vector<104x128xf32>
    %c0_11 = arith.constant 0 : index
    %c0_12 = arith.constant 0 : index
    %36 = vector.load %arg3[%c0_11, %c0_12] : memref<104x128xf32, #tpu.memory_space<vmem>>, vector<104x128xf32>
    %37 = arith.mulf %23, %36 : vector<104x128xf32>
    %38 = arith.addf %35, %37 : vector<104x128xf32>
    %39 = math.tanh %38 : vector<104x128xf32>
    %40 = arith.mulf %31, %39 : vector<104x128xf32>
    %c0_13 = arith.constant 0 : index
    %c0_14 = arith.constant 0 : index
    %41 = vector.load %arg6[%c0_13, %c0_14] : memref<104x128xf32, #tpu.memory_space<vmem>>, vector<104x128xf32>
    tpu.vector_store %arg6[%c0_13, %c0_14], %40 {strides = array<i32>} : memref<104x128xf32, #tpu.memory_space<vmem>>, vector<104x128xf32>,
    %c0_15 = arith.constant 0 : index
    %c0_16 = arith.constant 0 : index
    %42 = vector.load %arg7[%c0_15, %c0_16] : memref<104x128xf32, #tpu.memory_space<vmem>>, vector<104x128xf32>
    tpu.vector_store %arg7[%c0_15, %c0_16], %38 {strides = array<i32>} : memref<104x128xf32, #tpu.memory_space<vmem>>, vector<104x128xf32>,
    return
  }
  func.func @transform_0(%arg0: i32) -> (i32, i32) {
    %c0_i32 = arith.constant 0 : i32
    %c0_i32_0 = arith.constant 0 : i32
    return %arg0, %c0_i32 : i32, i32
  }
  func.func @transform_1(%arg0: i32) -> (i32, i32) {
    %c0_i32 = arith.constant 0 : i32
    %c0_i32_0 = arith.constant 0 : i32
    return %arg0, %c0_i32 : i32, i32
  }
  func.func @transform_2(%arg0: i32) -> (i32, i32) {
    %c0_i32 = arith.constant 0 : i32
    %c0_i32_0 = arith.constant 0 : i32
    return %arg0, %c0_i32 : i32, i32
  }
  func.func @transform_3(%arg0: i32) -> (i32, i32) {
    %c0_i32 = arith.constant 0 : i32
    %c0_i32_0 = arith.constant 0 : i32
    %c0_i32_1 = arith.constant 0 : i32
    return %c0_i32, %c0_i32_0 : i32, i32
  }
  func.func @transform_4(%arg0: i32) -> (i32, i32) {
    %c0_i32 = arith.constant 0 : i32
    %c0_i32_0 = arith.constant 0 : i32
    %c0_i32_1 = arith.constant 0 : i32
    return %c0_i32, %c0_i32_0 : i32, i32
  }
  func.func @transform_5(%arg0: i32) -> (i32, i32) {
    %c0_i32 = arith.constant 0 : i32
    %c0_i32_0 = arith.constant 0 : i32
    return %arg0, %c0_i32 : i32, i32
  }
  func.func @transform_6(%arg0: i32) -> (i32, i32) {
    %c0_i32 = arith.constant 0 : i32
    %c0_i32_0 = arith.constant 0 : i32
    return %arg0, %c0_i32 : i32, i32
  }
}

</mosaic_0001>

<bundles_post_ra>
// kernel: _tree_lstm_cell_impl.1
= control target key start
LH: loop header
LB: loop body
LE: loop exit
PB: predicated region body
PF: predicated region fallthrough
CT: control target
= control target key end

     0   :  { %s2007_s21 = smov 0   ;;  %s2997_s0 = inlined_call_operand.vmem [shape: f32[208,256], index: 0, kind: input, shape index: {}]   ;;  %s2998_s1 = inlined_call_operand.vmem [shape: f32[208,128], index: 1, kind: input, shape index: {}]   ;;  %s2999_s2 = inlined_call_operand.vmem [shape: f32[208,128], index: 2, kind: input, shape index: {}]   ;;  %s3000_s3 = inlined_call_operand.vmem [shape: f32[256,640], index: 3, kind: input, shape index: {}]   ;;  %s3001_s4 = inlined_call_operand.vmem [shape: f32[1,640], index: 4, kind: input, shape index: {}]   ;;  %s3002_s5 = inlined_call_operand.vmem [shape: f32[208,128], index: 5, kind: output, shape index: {0}]   ;;  %s3003_s6 = inlined_call_operand.vmem [shape: f32[208,128], index: 6, kind: output, shape index: {1}]  }
   0x1 LB: > { %s1527_s22 = sadd.s32 4294967295, %s1970_s21   ;;  %p1531_p0 = scmp.ge.s32.totalorder %s1970_s21, 1  ;;  %s1970_s21 = sphi %s2007_s21, %s17_s21  }
   0x2   : > { %p239_p1 = scmp.lt.s32.totalorder %s1970_s21, 3 }
   0x4   : > { %p240_p2 = pnand %p1531_p0, %p239_p1 }
   0x5   : > { %s2293_s7 = smul.u32 (!%p240_p2), 13, %s1527_s22 }
   0x6   : > { %243 = sbr.rel (%p240_p2) target bundleno = 427 (0x1ab), region = 40 }
   0x7   : > { %p286_p3 = scmp.lt.s32.totalorder (!%p240_p2), %s2293_s7, 25 }
   0xb   : > { %v418_v0 = vld [vmem:[%s3000_s3 + $0x260] sm:$0xff]  ;;  %v420_v1 = vld [vmem:[%s3000_s3 + $0x270] sm:$0xff]  ;;  %v417_v2 = vld [vmem:[%s3000_s3 + $0x258] sm:$0xff]  ;;  %s3005_s7 = smov (!%p286_p3, %s2293_s7), 25 }
   0xc   : > { %529 = vmatprep.subr.mxu0 %v418_v0  ;;  %672 = vmatprep.subr.mxu1 %v420_v1  ;;  %v419_v3 = vld [vmem:[%s3000_s3 + $0x268] sm:$0xff]  ;;  %v413_v4 = vld [vmem:[%s3000_s3 + $0x238] sm:$0xff]  ;;  %v412_v6 = vld [vmem:[%s3000_s3 + $0x230] sm:$0xff]  ;;  %s1592_s12 = sshll.u32 %s3005_s7, 4  ;;  %s2685_s19 = sshll.u32 %s3005_s7, 3 }
   0xd   : > { %v415_v5 = vld [vmem:[%s3000_s3 + $0x248] sm:$0xff]  ;;  %530 = vmatpush1.msra.mxu0 %v417_v2  ;;  %673 = vmatpush1.msra.mxu1 %v419_v3  ;;  %v414_v7 = vld [vmem:[%s3000_s3 + $0x240] sm:$0xff]  ;;  %v408_v8 = vld [vmem:[%s3000_s3 + $0x210] sm:$0xff]  ;;  %s2395_s28 = scalar_lea.vmem %s2997_s0, %s1592_s12  ;;  %s2699_s23 = scalar_lea.vmem %s2999_s2, %s2685_s19 }
   0xe   : > { %531 = vmatprep.subr.mxu0 %v413_v4  ;;  %674 = vmatprep.subr.mxu1 %v415_v5  ;;  %v410_v9 = vld [vmem:[%s3000_s3 + $0x220] sm:$0xff]  ;;  %v407_v10 = vld [vmem:[%s3000_s3 + $0x208] sm:$0xff]  ;;  %v409_v11 = vld [vmem:[%s3000_s3 + $0x218] sm:$0xff]  ;;  %s2705_s26 = scalar_lea.vmem %s2998_s1, %s2685_s19  ;;  %s2739_s30 = scalar_lea.vmem %s3003_s6, %s2685_s19 }
   0xf   : > { %532 = vmatpush1.msra.mxu0 %v412_v6  ;;  %675 = vmatpush1.msra.mxu1 %v414_v7  ;;  %v403_v12 = vld [vmem:[%s3000_s3 + $0x1e8] sm:$0xff]  ;;  %v405_v13 = vld [vmem:[%s3000_s3 + $0x1f8] sm:$0xff]  ;;  %v402_v14 = vld [vmem:[%s3000_s3 + $0x1e0] sm:$0xff]  ;;  %s2970_s10 = scalar_lea.vmem %s3002_s5, %s2685_s19 }
  0x10   : > { %533 = vmatprep.subr.mxu0 %v408_v8  ;;  %676 = vmatprep.subr.mxu1 %v410_v9  ;;  %v404_v15 = vld [vmem:[%s3000_s3 + $0x1f0] sm:$0xff]  ;;  %v398_v16 = vld [vmem:[%s3000_s3 + $0x1c0] sm:$0xff]  ;;  %v397_v18 = vld [vmem:[%s3000_s3 + $0x1b8] sm:$0xff] }
  0x11   : > { %534 = vmatpush1.msra.mxu0 %v407_v10  ;;  %677 = vmatpush1.msra.mxu1 %v409_v11  ;;  %v400_v17 = vld [vmem:[%s3000_s3 + $0x1d0] sm:$0xff]  ;;  %v399_v19 = vld [vmem:[%s3000_s3 + $0x1c8] sm:$0xff]  ;;  %v393_v20 = vld [vmem:[%s3000_s3 + $0x198] sm:$0xff] }
  0x12   : > { %535 = vmatprep.subr.mxu0 %v403_v12  ;;  %678 = vmatprep.subr.mxu1 %v405_v13  ;;  %v395_v21 = vld [vmem:[%s3000_s3 + $0x1a8] sm:$0xff]  ;;  %v392_v22 = vld [vmem:[%s3000_s3 + $0x190] sm:$0xff]  ;;  %v394_v23 = vld [vmem:[%s3000_s3 + $0x1a0] sm:$0xff] }
  0x13   : > { %536 = vmatpush1.msra.mxu0 %v402_v14  ;;  %679 = vmatpush1.msra.mxu1 %v404_v15  ;;  %v388_v24 = vld [vmem:[%s3000_s3 + $0x170] sm:$0xff]  ;;  %v390_v25 = vld [vmem:[%s3000_s3 + $0x180] sm:$0xff]  ;;  %v387_v26 = vld [vmem:[%s3000_s3 + $0x168] sm:$0xff] }
  0x14   : > { %537 = vmatprep.subr.mxu0 %v398_v16  ;;  %680 = vmatprep.subr.mxu1 %v400_v17  ;;  %v389_v27 = vld [vmem:[%s3000_s3 + $0x178] sm:$0xff]  ;;  %v383_v28 = vld [vmem:[%s3000_s3 + $0x148] sm:$0xff]  ;;  %v382_v30 = vld [vmem:[%s3000_s3 + $0x140] sm:$0xff] }
  0x15   : > { %538 = vmatpush1.msra.mxu0 %v397_v18  ;;  %681 = vmatpush1.msra.mxu1 %v399_v19  ;;  %v385_v29 = vld [vmem:[%s3000_s3 + $0x158] sm:$0xff]  ;;  %v384_v31 = vld [vmem:[%s3000_s3 + $0x150] sm:$0xff]  ;;  %v378_v32 = vld [vmem:[%s3000_s3 + $0x120] sm:$0xff] }
  0x16   : > { %539 = vmatprep.subr.mxu0 %v393_v20  ;;  %682 = vmatprep.subr.mxu1 %v395_v21  ;;  %v380_v33 = vld [vmem:[%s3000_s3 + $0x130] sm:$0xff]  ;;  %v377_v34 = vld [vmem:[%s3000_s3 + $0x118] sm:$0xff]  ;;  %v379_v35 = vld [vmem:[%s3000_s3 + $0x128] sm:$0xff] }
  0x17   : > { %540 = vmatpush1.msra.mxu0 %v392_v22  ;;  %683 = vmatpush1.msra.mxu1 %v394_v23  ;;  %v373_v36 = vld [vmem:[%s3000_s3 + $0xf8] sm:$0xff]  ;;  %v375_v37 = vld [vmem:[%s3000_s3 + $0x108] sm:$0xff]  ;;  %v372_v38 = vld [vmem:[%s3000_s3 + $0xf0] sm:$0xff] }
  0x18   : > { %541 = vmatprep.subr.mxu0 %v388_v24  ;;  %684 = vmatprep.subr.mxu1 %v390_v25  ;;  %v374_v39 = vld [vmem:[%s3000_s3 + $0x100] sm:$0xff]  ;;  %v368_v40 = vld [vmem:[%s3000_s3 + $0xd0] sm:$0xff]  ;;  %v367_v42 = vld [vmem:[%s3000_s3 + $0xc8] sm:$0xff] }
  0x19   : > { %542 = vmatpush1.msra.mxu0 %v387_v26  ;;  %685 = vmatpush1.msra.mxu1 %v389_v27  ;;  %v370_v41 = vld [vmem:[%s3000_s3 + $0xe0] sm:$0xff]  ;;  %v369_v43 = vld [vmem:[%s3000_s3 + $0xd8] sm:$0xff]  ;;  %v363_v44 = vld [vmem:[%s3000_s3 + $0xa8] sm:$0xff] }
  0x1a   : > { %543 = vmatprep.subr.mxu0 %v383_v28  ;;  %686 = vmatprep.subr.mxu1 %v385_v29  ;;  %v365_v45 = vld [vmem:[%s3000_s3 + $0xb8] sm:$0xff]  ;;  %v362_v46 = vld [vmem:[%s3000_s3 + $0xa0] sm:$0xff]  ;;  %v364_v47 = vld [vmem:[%s3000_s3 + $0xb0] sm:$0xff] }
  0x1b   : > { %544 = vmatpush1.msra.mxu0 %v382_v30  ;;  %687 = vmatpush1.msra.mxu1 %v384_v31  ;;  %v358_v48 = vld [vmem:[%s3000_s3 + $0x80] sm:$0xff]  ;;  %v360_v49 = vld [vmem:[%s3000_s3 + $0x90] sm:$0xff]  ;;  %v357_v50 = vld [vmem:[%s3000_s3 + $0x78] sm:$0xff] }
  0x1c   : > { %545 = vmatprep.subr.mxu0 %v378_v32  ;;  %688 = vmatprep.subr.mxu1 %v380_v33  ;;  %v359_v51 = vld [vmem:[%s3000_s3 + $0x88] sm:$0xff]  ;;  %v353_v52 = vld [vmem:[%s3000_s3 + $0x58] sm:$0xff]  ;;  %v352_v54 = vld [vmem:[%s3000_s3 + $0x50] sm:$0xff] }
  0x1d   : > { %546 = vmatpush1.msra.mxu0 %v377_v34  ;;  %689 = vmatpush1.msra.mxu1 %v379_v35  ;;  %v355_v53 = vld [vmem:[%s3000_s3 + $0x68] sm:$0xff]  ;;  %v354_v55 = vld [vmem:[%s3000_s3 + $0x60] sm:$0xff]  ;;  %v348_v56 = vld [vmem:[%s3000_s3 + $0x30] sm:$0xff] }
  0x1e   : > { %547 = vmatprep.subr.mxu0 %v373_v36  ;;  %690 = vmatprep.subr.mxu1 %v375_v37  ;;  %v350_v57 = vld [vmem:[%s3000_s3 + $0x40] sm:$0xff]  ;;  %v347_v58 = vld [vmem:[%s3000_s3 + $0x28] sm:$0xff]  ;;  %v349_v59 = vld [vmem:[%s3000_s3 + $0x38] sm:$0xff] }
  0x1f   : > { %548 = vmatpush1.msra.mxu0 %v372_v38  ;;  %691 = vmatpush1.msra.mxu1 %v374_v39  ;;  %v343_v60 = vld [vmem:[%s3000_s3 + $0x8] sm:$0xff]  ;;  %v345_v61 = vld [vmem:[%s3000_s3 + $0x18] sm:$0xff]  ;;  %v342_v62 = vld [vmem:[%s3000_s3] sm:$0xff] }
  0x20   : > { %549 = vmatprep.subr.mxu0 %v368_v40  ;;  %692 = vmatprep.subr.mxu1 %v370_v41  ;;  %v344_v63 = vld [vmem:[%s3000_s3 + $0x10] sm:$0xff]  ;;  %v498_v0 = vld [vmem:[%s3000_s3 + $0x4e0] sm:$0xff]  ;;  %v497_v2 = vld [vmem:[%s3000_s3 + $0x4d8] sm:$0xff] }
  0x21   : > { %550 = vmatpush1.msra.mxu0 %v367_v42  ;;  %693 = vmatpush1.msra.mxu1 %v369_v43  ;;  %v500_v1 = vld [vmem:[%s3000_s3 + $0x4f0] sm:$0xff]  ;;  %v499_v3 = vld [vmem:[%s3000_s3 + $0x4e8] sm:$0xff]  ;;  %v493_v4 = vld [vmem:[%s3000_s3 + $0x4b8] sm:$0xff] }
  0x22   : > { %551 = vmatprep.subr.mxu0 %v363_v44  ;;  %694 = vmatprep.subr.mxu1 %v365_v45  ;;  %v495_v5 = vld [vmem:[%s3000_s3 + $0x4c8] sm:$0xff]  ;;  %v492_v6 = vld [vmem:[%s3000_s3 + $0x4b0] sm:$0xff]  ;;  %v494_v7 = vld [vmem:[%s3000_s3 + $0x4c0] sm:$0xff] }
  0x23   : > { %552 = vmatpush1.msra.mxu0 %v362_v46  ;;  %695 = vmatpush1.msra.mxu1 %v364_v47  ;;  %v488_v8 = vld [vmem:[%s3000_s3 + $0x490] sm:$0xff]  ;;  %v490_v9 = vld [vmem:[%s3000_s3 + $0x4a0] sm:$0xff]  ;;  %v487_v10 = vld [vmem:[%s3000_s3 + $0x488] sm:$0xff] }
  0x24   : > { %553 = vmatprep.subr.mxu0 %v358_v48  ;;  %696 = vmatprep.subr.mxu1 %v360_v49  ;;  %v489_v11 = vld [vmem:[%s3000_s3 + $0x498] sm:$0xff]  ;;  %v483_v12 = vld [vmem:[%s3000_s3 + $0x468] sm:$0xff]  ;;  %v482_v14 = vld [vmem:[%s3000_s3 + $0x460] sm:$0xff] }
  0x25   : > { %554 = vmatpush1.msra.mxu0 %v357_v50  ;;  %697 = vmatpush1.msra.mxu1 %v359_v51  ;;  %v485_v13 = vld [vmem:[%s3000_s3 + $0x478] sm:$0xff]  ;;  %v484_v15 = vld [vmem:[%s3000_s3 + $0x470] sm:$0xff]  ;;  %v478_v16 = vld [vmem:[%s3000_s3 + $0x440] sm:$0xff] }
  0x26   : > { %555 = vmatprep.subr.mxu0 %v353_v52  ;;  %698 = vmatprep.subr.mxu1 %v355_v53  ;;  %v480_v17 = vld [vmem:[%s3000_s3 + $0x450] sm:$0xff]  ;;  %v477_v18 = vld [vmem:[%s3000_s3 + $0x438] sm:$0xff]  ;;  %v479_v19 = vld [vmem:[%s3000_s3 + $0x448] sm:$0xff] }
  0x27   : > { %556 = vmatpush1.msra.mxu0 %v352_v54  ;;  %699 = vmatpush1.msra.mxu1 %v354_v55  ;;  %v473_v20 = vld [vmem:[%s3000_s3 + $0x418] sm:$0xff]  ;;  %v475_v21 = vld [vmem:[%s3000_s3 + $0x428] sm:$0xff]  ;;  %v472_v22 = vld [vmem:[%s3000_s3 + $0x410] sm:$0xff] }
  0x28   : > { %557 = vmatprep.subr.mxu0 %v348_v56  ;;  %700 = vmatprep.subr.mxu1 %v350_v57  ;;  %v474_v23 = vld [vmem:[%s3000_s3 + $0x420] sm:$0xff]  ;;  %v468_v24 = vld [vmem:[%s3000_s3 + $0x3f0] sm:$0xff]  ;;  %v467_v26 = vld [vmem:[%s3000_s3 + $0x3e8] sm:$0xff] }
  0x29   : > { %558 = vmatpush1.msra.mxu0 %v347_v58  ;;  %701 = vmatpush1.msra.mxu1 %v349_v59  ;;  %v470_v25 = vld [vmem:[%s3000_s3 + $0x400] sm:$0xff]  ;;  %v469_v27 = vld [vmem:[%s3000_s3 + $0x3f8] sm:$0xff]  ;;  %v463_v28 = vld [vmem:[%s3000_s3 + $0x3c8] sm:$0xff] }
  0x2a   : > { %559 = vmatprep.subr.mxu0 %v343_v60  ;;  %702 = vmatprep.subr.mxu1 %v345_v61  ;;  %v465_v29 = vld [vmem:[%s3000_s3 + $0x3d8] sm:$0xff]  ;;  %v462_v30 = vld [vmem:[%s3000_s3 + $0x3c0] sm:$0xff]  ;;  %v464_v31 = vld [vmem:[%s3000_s3 + $0x3d0] sm:$0xff] }
  0x2b   : > { %560 = vmatpush1.msra.mxu0 %v342_v62  ;;  %703 = vmatpush1.msra.mxu1 %v344_v63  ;;  %v458_v32 = vld [vmem:[%s3000_s3 + $0x3a0] sm:$0xff]  ;;  %v460_v33 = vld [vmem:[%s3000_s3 + $0x3b0] sm:$0xff]  ;;  %v457_v34 = vld [vmem:[%s3000_s3 + $0x398] sm:$0xff] }
  0x2c   : > { %561 = vmatprep.subr.mxu0 %v498_v0  ;;  %704 = vmatprep.subr.mxu1 %v500_v1  ;;  %v459_v35 = vld [vmem:[%s3000_s3 + $0x3a8] sm:$0xff]  ;;  %v453_v36 = vld [vmem:[%s3000_s3 + $0x378] sm:$0xff]  ;;  %v452_v38 = vld [vmem:[%s3000_s3 + $0x370] sm:$0xff] }
  0x2d   : > { %562 = vmatpush2.msra.mxu0 %v497_v2  ;;  %705 = vmatpush2.msra.mxu1 %v499_v3  ;;  %v455_v37 = vld [vmem:[%s3000_s3 + $0x388] sm:$0xff]  ;;  %v454_v39 = vld [vmem:[%s3000_s3 + $0x380] sm:$0xff]  ;;  %v448_v40 = vld [vmem:[%s3000_s3 + $0x350] sm:$0xff] }
  0x2e   : > { %563 = vmatprep.subr.mxu0 %v493_v4  ;;  %706 = vmatprep.subr.mxu1 %v495_v5  ;;  %v450_v41 = vld [vmem:[%s3000_s3 + $0x360] sm:$0xff]  ;;  %v447_v42 = vld [vmem:[%s3000_s3 + $0x348] sm:$0xff]  ;;  %v449_v43 = vld [vmem:[%s3000_s3 + $0x358] sm:$0xff] }
  0x2f   : > { %564 = vmatpush2.msra.mxu0 %v492_v6  ;;  %707 = vmatpush2.msra.mxu1 %v494_v7  ;;  %v443_v44 = vld [vmem:[%s3000_s3 + $0x328] sm:$0xff]  ;;  %v445_v45 = vld [vmem:[%s3000_s3 + $0x338] sm:$0xff]  ;;  %v442_v46 = vld [vmem:[%s3000_s3 + $0x320] sm:$0xff] }
  0x30   : > { %565 = vmatprep.subr.mxu0 %v488_v8  ;;  %708 = vmatprep.subr.mxu1 %v490_v9  ;;  %v444_v47 = vld [vmem:[%s3000_s3 + $0x330] sm:$0xff]  ;;  %v438_v48 = vld [vmem:[%s3000_s3 + $0x300] sm:$0xff]  ;;  %v437_v50 = vld [vmem:[%s3000_s3 + $0x2f8] sm:$0xff] }
  0x31   : > { %566 = vmatpush2.msra.mxu0 %v487_v10  ;;  %709 = vmatpush2.msra.mxu1 %v489_v11  ;;  %v440_v49 = vld [vmem:[%s3000_s3 + $0x310] sm:$0xff]  ;;  %v439_v51 = vld [vmem:[%s3000_s3 + $0x308] sm:$0xff]  ;;  %v433_v52 = vld [vmem:[%s3000_s3 + $0x2d8] sm:$0xff] }
  0x32   : > { %567 = vmatprep.subr.mxu0 %v483_v12  ;;  %710 = vmatprep.subr.mxu1 %v485_v13  ;;  %v435_v53 = vld [vmem:[%s3000_s3 + $0x2e8] sm:$0xff]  ;;  %v432_v54 = vld [vmem:[%s3000_s3 + $0x2d0] sm:$0xff]  ;;  %v434_v55 = vld [vmem:[%s3000_s3 + $0x2e0] sm:$0xff] }
  0x33   : > { %568 = vmatpush2.msra.mxu0 %v482_v14  ;;  %711 = vmatpush2.msra.mxu1 %v484_v15  ;;  %v428_v56 = vld [vmem:[%s3000_s3 + $0x2b0] sm:$0xff]  ;;  %v430_v57 = vld [vmem:[%s3000_s3 + $0x2c0] sm:$0xff]  ;;  %v427_v58 = vld [vmem:[%s3000_s3 + $0x2a8] sm:$0xff] }
  0x34   : > { %569 = vmatprep.subr.mxu0 %v478_v16  ;;  %712 = vmatprep.subr.mxu1 %v480_v17  ;;  %v429_v59 = vld [vmem:[%s3000_s3 + $0x2b8] sm:$0xff]  ;;  %v423_v60 = vld [vmem:[%s3000_s3 + $0x288] sm:$0xff]  ;;  %v422_v62 = vld [vmem:[%s3000_s3 + $0x280] sm:$0xff] }
  0x35   : > { %570 = vmatpush2.msra.mxu0 %v477_v18  ;;  %713 = vmatpush2.msra.mxu1 %v479_v19  ;;  %v425_v61 = vld [vmem:[%s3000_s3 + $0x298] sm:$0xff]  ;;  %v2413_v63 = vld [vmem:[%s2395_s28 + $0x8] sm:$0xff]  ;;  %v424_v0 = vld [vmem:[%s3000_s3 + $0x290] sm:$0xff] }
  0x36   : > { %571 = vmatprep.subr.mxu0 %v473_v20  ;;  %714 = vmatprep.subr.mxu1 %v475_v21  ;;  %v2419_v1 = vld [vmem:[%s2395_s28] sm:$0xff]  ;;  %v501_v2 = vld [vmem:[%s3000_s3 + $0x4f8] sm:$0xff]  ;;  %v496_v5 = vld [vmem:[%s3000_s3 + $0x4d0] sm:$0xff] }
  0x37   : > { %572 = vmatpush2.msra.mxu0 %v472_v22  ;;  %715 = vmatpush2.msra.mxu1 %v474_v23  ;;  %v2426_v3 = vld [vmem:[%s2395_s28 + $0x18] sm:$0xff]  ;;  %v2439_v6 = vld [vmem:[%s2395_s28 + $0x10] sm:$0xff]  ;;  %v2446_v8 = vld [vmem:[%s2395_s28 + $0x28] sm:$0xff] }
  0x38   : > { %573 = vmatprep.subr.mxu0 %v468_v24  ;;  %716 = vmatprep.subr.mxu1 %v470_v25  ;;  %v421_v4 = vld [vmem:[%s3000_s3 + $0x278] sm:$0xff]  ;;  %v416_v7 = vld [vmem:[%s3000_s3 + $0x250] sm:$0xff]  ;;  %v491_v9 = vld [vmem:[%s3000_s3 + $0x4a8] sm:$0xff] }
  0x39   : > { %574 = vmatpush2.msra.mxu0 %v467_v26  ;;  %717 = vmatpush2.msra.mxu1 %v469_v27  ;;  %v2454_v10 = vld [vmem:[%s2395_s28 + $0x20] sm:$0xff]  ;;  %v411_v11 = vld [vmem:[%s3000_s3 + $0x228] sm:$0xff]  ;;  %v2465_v13 = vld [vmem:[%s2395_s28 + $0x38] sm:$0xff] }
  0x3a   : > { %575 = vmatprep.subr.mxu0 %v463_v28  ;;  %718 = vmatprep.subr.mxu1 %v465_v29  ;;  %v486_v12 = vld [vmem:[%s3000_s3 + $0x480] sm:$0xff]  ;;  %v2473_v15 = vld [vmem:[%s2395_s28 + $0x30] sm:$0xff]  ;;  %v481_v16 = vld [vmem:[%s3000_s3 + $0x458] sm:$0xff] }
  0x3b   : > { %576 = vmatpush2.msra.mxu0 %v462_v30  ;;  %719 = vmatpush2.msra.mxu1 %v464_v31  ;;  %v406_v14 = vld [vmem:[%s3000_s3 + $0x200] sm:$0xff]  ;;  %v401_v17 = vld [vmem:[%s3000_s3 + $0x1d8] sm:$0xff]  ;;  %v2485_v18 = vld [vmem:[%s2395_s28 + $0x48] sm:$0xff] }
  0x3c   : > { %577 = vmatprep.subr.mxu0 %v458_v32  ;;  %720 = vmatprep.subr.mxu1 %v460_v33  ;;  %v2489_v19 = vld [vmem:[%s2395_s28 + $0x40] sm:$0xff]  ;;  %v476_v20 = vld [vmem:[%s3000_s3 + $0x430] sm:$0xff]  ;;  %v2502_v22 = vld [vmem:[%s2395_s28 + $0x58] sm:$0xff] }
  0x3d   : > { %578 = vmatpush2.msra.mxu0 %v457_v34  ;;  %721 = vmatpush2.msra.mxu1 %v459_v35  ;;  %v396_v21 = vld [vmem:[%s3000_s3 + $0x1b0] sm:$0xff]  ;;  %v471_v24 = vld [vmem:[%s3000_s3 + $0x408] sm:$0xff]  ;;  %v466_v27 = vld [vmem:[%s3000_s3 + $0x3e0] sm:$0xff] }
  0x3e   : > { %579 = vmatprep.subr.mxu0 %v453_v36  ;;  %722 = vmatprep.subr.mxu1 %v455_v37  ;;  %v2505_v23 = vld [vmem:[%s2395_s28 + $0x50] sm:$0xff]  ;;  %v391_v25 = vld [vmem:[%s3000_s3 + $0x188] sm:$0xff]  ;;  %v2524_v28 = vld [vmem:[%s2395_s28 + $0x60] sm:$0xff] }
  0x3f   : > { %580 = vmatpush2.msra.mxu0 %v452_v38  ;;  %723 = vmatpush2.msra.mxu1 %v454_v39  ;;  %v2518_v26 = vld [vmem:[%s2395_s28 + $0x68] sm:$0xff]  ;;  %v386_v29 = vld [vmem:[%s3000_s3 + $0x160] sm:$0xff]  ;;  %v461_v30 = vld [vmem:[%s3000_s3 + $0x3b8] sm:$0xff] }
  0x40   : > { %581 = vmatprep.subr.mxu0 %v448_v40  ;;  %724 = vmatprep.subr.mxu1 %v450_v41  ;;  %v2536_v31 = vld [vmem:[%s2395_s28 + $0x78] sm:$0xff]  ;;  %v2543_v33 = vld [vmem:[%s2395_s28 + $0x70] sm:$0xff]  ;;  %v2552_v35 = vld [vmem:[%s2395_s28 + $0x88] sm:$0xff] }
  0x41   : > { %582 = vmatpush2.msra.mxu0 %v447_v42  ;;  %725 = vmatpush2.msra.mxu1 %v449_v43  ;;  %v381_v32 = vld [vmem:[%s3000_s3 + $0x138] sm:$0xff]  ;;  %v456_v34 = vld [vmem:[%s3000_s3 + $0x390] sm:$0xff]  ;;  %v2559_v37 = vld [vmem:[%s2395_s28 + $0x80] sm:$0xff] }
  0x42   : > { %583 = vmatprep.subr.mxu0 %v443_v44  ;;  %726 = vmatprep.subr.mxu1 %v445_v45  ;;  %v376_v36 = vld [vmem:[%s3000_s3 + $0x110] sm:$0xff]  ;;  %v451_v38 = vld [vmem:[%s3000_s3 + $0x368] sm:$0xff]  ;;  %v2570_v40 = vld [vmem:[%s2395_s28 + $0x98] sm:$0xff] }
  0x43   : > { %584 = vmatpush2.msra.mxu0 %v442_v46  ;;  %727 = vmatpush2.msra.mxu1 %v444_v47  ;;  %v371_v39 = vld [vmem:[%s3000_s3 + $0xe8] sm:$0xff]  ;;  %v2575_v41 = vld [vmem:[%s2395_s28 + $0x90] sm:$0xff]  ;;  %v446_v42 = vld [vmem:[%s3000_s3 + $0x340] sm:$0xff] }
  0x44   : > { %585 = vmatprep.subr.mxu0 %v438_v48  ;;  %728 = vmatprep.subr.mxu1 %v440_v49  ;;  %v366_v43 = vld [vmem:[%s3000_s3 + $0xc0] sm:$0xff]  ;;  %v337_v44 = vld [vmem:[%s2395_s28 + $0xa8] sm:$0xff]  ;;  %v441_v45 = vld [vmem:[%s3000_s3 + $0x318] sm:$0xff] }
  0x45   : > { %586 = vmatpush2.msra.mxu0 %v437_v50  ;;  %729 = vmatpush2.msra.mxu1 %v439_v51  ;;  %v336_v46 = vld [vmem:[%s2395_s28 + $0xa0] sm:$0xff]  ;;  %v361_v47 = vld [vmem:[%s3000_s3 + $0x98] sm:$0xff]  ;;  %v436_v49 = vld [vmem:[%s3000_s3 + $0x2f0] sm:$0xff] }
  0x46   : > { %587 = vmatprep.subr.mxu0 %v433_v52  ;;  %730 = vmatprep.subr.mxu1 %v435_v53  ;;  %v339_v48 = vld [vmem:[%s2395_s28 + $0xb8] sm:$0xff]  ;;  %v338_v50 = vld [vmem:[%s2395_s28 + $0xb0] sm:$0xff]  ;;  %v431_v52 = vld [vmem:[%s3000_s3 + $0x2c8] sm:$0xff] }
  0x47   : > { %588 = vmatpush2.msra.mxu0 %v432_v54  ;;  %731 = vmatpush2.msra.mxu1 %v434_v55  ;;  %v356_v51 = vld [vmem:[%s3000_s3 + $0x70] sm:$0xff]  ;;  %v341_v53 = vld [vmem:[%s2395_s28 + $0xc8] sm:$0xff]  ;;  %v340_v55 = vld [vmem:[%s2395_s28 + $0xc0] sm:$0xff] }
  0x48   : > { %589 = vmatprep.subr.mxu0 %v428_v56  ;;  %732 = vmatprep.subr.mxu1 %v430_v57  ;;  %v351_v54 = vld [vmem:[%s3000_s3 + $0x48] sm:$0xff]  ;;  %v426_v56 = vld [vmem:[%s3000_s3 + $0x2a0] sm:$0xff] }
  0x49   : > { %590 = vmatpush2.msra.mxu0 %v427_v58  ;;  %733 = vmatpush2.msra.mxu1 %v429_v59  ;;  %v346_v57 = vld [vmem:[%s3000_s3 + $0x20] sm:$0xff]  ;;  %v504_v58 = vlaneseq }
  0x4a   : > { %591 = vmatprep.subr.mxu0 %v423_v60  ;;  %734 = vmatprep.subr.mxu1 %v425_v61 }
  0x4b   : > { %592 = vmatpush2.msra.mxu0 %v422_v62  ;;  %593 = vmatprep.mubr.f32.mxu0 %v2413_v63  ;;  %v2637_v59 = vshrl.u32 %v504_v58, 7  ;;  %v2644_v62 = vld [vmem:[%s3001_s4] sm:$0x1f] }
  0x4c   : > { %735 = vmatpush2.msra.mxu1 %v424_v0  ;;  %736 = vmatprep.mubr.f32.mxu1 %v2413_v63 }
  0x4d   : > { %594 = vmatmul.mubr.f32.vlgmr.msra.gmra.mxu0 %v2419_v1  ;;  %737 = vmatmul.mubr.f32.vlgmr.msra.gmra.mxu1 %v2419_v1  ;;  %v506_v60 = vsub.s32 0, %v2637_v59  ;;  %v514_v61 = vsub.s32 2, %v2637_v59 }
  0x4e   : > { %1593 = vmatprep.subr.mxu0 %v501_v2  ;;  %599 = vmatprep.mubr.f32.mxu0 %v2426_v3 }
  0x4f   : > { %1594 = vmatpush3.msra.mxu0 %v421_v4  ;;  %742 = vmatprep.mubr.f32.mxu1 %v2426_v3  ;;  %v2648_v0 = vrot.slane %v2644_v62, %v506_v60 }
  0x50   : > { %1664 = vmatprep.subr.mxu1 %v501_v2  ;;  %1595 = vmatprep.subr.mxu0 %v496_v5 }
  0x51   : > { %600 = vmatmul.mubr.f32.gmra.mxu0 %v2439_v6  ;;  %743 = vmatmul.mubr.f32.gmra.mxu1 %v2439_v6 }
  0x52   : > { %1680 = vmatpush3.msra.mxu1 %v421_v4  ;;  %1596 = vmatpush3.msra.mxu0 %v416_v7 }
  0x53   : > { %605 = vmatprep.mubr.f32.mxu0 %v2446_v8  ;;  %748 = vmatprep.mubr.f32.mxu1 %v2446_v8 }
  0x54   : > { %1597 = vmatprep.subr.mxu0 %v491_v9  ;;  %1665 = vmatprep.subr.mxu1 %v496_v5  ;;  %v518_v5 = vsub.s32 3, %v2637_v59 }
  0x55   : > { %606 = vmatmul.mubr.f32.gmra.mxu0 %v2454_v10  ;;  %749 = vmatmul.mubr.f32.gmra.mxu1 %v2454_v10 }
  0x56   : > { %1598 = vmatpush3.msra.mxu0 %v411_v11  ;;  %1681 = vmatpush3.msra.mxu1 %v416_v7 }
  0x57   : > { %1599 = vmatprep.subr.mxu0 %v486_v12  ;;  %611 = vmatprep.mubr.f32.mxu0 %v2465_v13 }
  0x58   : > { %754 = vmatprep.mubr.f32.mxu1 %v2465_v13  ;;  %1666 = vmatprep.subr.mxu1 %v491_v9 }
  0x59   : > { %1600 = vmatpush3.msra.mxu0 %v406_v14  ;;  %755 = vmatmul.mubr.f32.gmra.mxu1 %v2473_v15 }
  0x5a   : > { %612 = vmatmul.mubr.f32.gmra.mxu0 %v2473_v15  ;;  %1682 = vmatpush3.msra.mxu1 %v411_v11 }
  0x5b   : > { %1601 = vmatprep.subr.mxu0 %v481_v16  ;;  %1667 = vmatprep.subr.mxu1 %v486_v12 }
  0x5c   : > { %1602 = vmatpush3.msra.mxu0 %v401_v17  ;;  %617 = vmatprep.mubr.f32.mxu0 %v2485_v18 }
  0x5d   : > { %760 = vmatprep.mubr.f32.mxu1 %v2485_v18  ;;  %1683 = vmatpush3.msra.mxu1 %v406_v14 }
  0x5e   : > { %618 = vmatmul.mubr.f32.gmra.mxu0 %v2489_v19  ;;  %761 = vmatmul.mubr.f32.gmra.mxu1 %v2489_v19 }
  0x5f   : > { %1668 = vmatprep.subr.mxu1 %v481_v16  ;;  %1603 = vmatprep.subr.mxu0 %v476_v20 }
  0x60   : > { %1684 = vmatpush3.msra.mxu1 %v401_v17  ;;  %1604 = vmatpush3.msra.mxu0 %v396_v21 }
  0x61   : > { %623 = vmatprep.mubr.f32.mxu0 %v2502_v22  ;;  %766 = vmatprep.mubr.f32.mxu1 %v2502_v22 }
  0x62   : > { %624 = vmatmul.mubr.f32.gmra.mxu0 %v2505_v23  ;;  %767 = vmatmul.mubr.f32.gmra.mxu1 %v2505_v23 }
  0x63   : > { %1605 = vmatprep.subr.mxu0 %v471_v24  ;;  %1669 = vmatprep.subr.mxu1 %v476_v20 }
  0x64   : > { %1606 = vmatpush3.msra.mxu0 %v391_v25  ;;  %1685 = vmatpush3.msra.mxu1 %v396_v21 }
  0x65   : > { %629 = vmatprep.mubr.f32.mxu0 %v2518_v26  ;;  %772 = vmatprep.mubr.f32.mxu1 %v2518_v26 }
  0x66   : > { %1607 = vmatprep.subr.mxu0 %v466_v27  ;;  %630 = vmatmul.mubr.f32.gmra.mxu0 %v2524_v28 }
  0x67   : > { %773 = vmatmul.mubr.f32.gmra.mxu1 %v2524_v28  ;;  %1670 = vmatprep.subr.mxu1 %v471_v24 }
  0x68   : > { %1608 = vmatpush3.msra.mxu0 %v386_v29  ;;  %1686 = vmatpush3.msra.mxu1 %v391_v25 }
  0x69   : > { %1609 = vmatprep.subr.mxu0 %v461_v30  ;;  %635 = vmatprep.mubr.f32.mxu0 %v2536_v31 }
  0x6a   : > { %778 = vmatprep.mubr.f32.mxu1 %v2536_v31  ;;  %1671 = vmatprep.subr.mxu1 %v466_v27 }
  0x6b   : > { %1610 = vmatpush3.msra.mxu0 %v381_v32  ;;  %779 = vmatmul.mubr.f32.gmra.mxu1 %v2543_v33 }
  0x6c   : > { %636 = vmatmul.mubr.f32.gmra.mxu0 %v2543_v33  ;;  %1687 = vmatpush3.msra.mxu1 %v386_v29 }
  0x6d   : > { %1672 = vmatprep.subr.mxu1 %v461_v30  ;;  %1611 = vmatprep.subr.mxu0 %v456_v34 }
  0x6e   : > { %641 = vmatprep.mubr.f32.mxu0 %v2552_v35  ;;  %784 = vmatprep.mubr.f32.mxu1 %v2552_v35 }
  0x6f   : > { %1688 = vmatpush3.msra.mxu1 %v381_v32  ;;  %1612 = vmatpush3.msra.mxu0 %v376_v36 }
  0x70   : > { %642 = vmatmul.mubr.f32.gmra.mxu0 %v2559_v37  ;;  %785 = vmatmul.mubr.f32.gmra.mxu1 %v2559_v37 }
  0x71   : > { %1613 = vmatprep.subr.mxu0 %v451_v38  ;;  %1673 = vmatprep.subr.mxu1 %v456_v34 }
  0x72   : > { %1614 = vmatpush3.msra.mxu0 %v371_v39  ;;  %647 = vmatprep.mubr.f32.mxu0 %v2570_v40 }
  0x73   : > { %790 = vmatprep.mubr.f32.mxu1 %v2570_v40  ;;  %1689 = vmatpush3.msra.mxu1 %v376_v36 }
  0x74   : > { %648 = vmatmul.mubr.f32.gmra.mxu0 %v2575_v41  ;;  %791 = vmatmul.mubr.f32.gmra.mxu1 %v2575_v41 }
  0x75   : > { %1615 = vmatprep.subr.mxu0 %v446_v42  ;;  %1674 = vmatprep.subr.mxu1 %v451_v38 }
  0x76   : > { %1616 = vmatpush3.msra.mxu0 %v366_v43  ;;  %1690 = vmatpush3.msra.mxu1 %v371_v39 }
  0x77   : > { %653 = vmatprep.mubr.f32.mxu0 %v337_v44  ;;  %796 = vmatprep.mubr.f32.mxu1 %v337_v44 }
  0x78   : > { %1617 = vmatprep.subr.mxu0 %v441_v45  ;;  %654 = vmatmul.mubr.f32.gmra.mxu0 %v336_v46 }
  0x79   : > { %797 = vmatmul.mubr.f32.gmra.mxu1 %v336_v46  ;;  %1675 = vmatprep.subr.mxu1 %v446_v42 }
  0x7a   : > { %1618 = vmatpush3.msra.mxu0 %v361_v47  ;;  %1691 = vmatpush3.msra.mxu1 %v366_v43 }
  0x7b   : > { %659 = vmatprep.mubr.f32.mxu0 %v339_v48  ;;  %802 = vmatprep.mubr.f32.mxu1 %v339_v48 }
  0x7c   : > { %1676 = vmatprep.subr.mxu1 %v441_v45  ;;  %1619 = vmatprep.subr.mxu0 %v436_v49 }
  0x7d   : > { %660 = vmatmul.mubr.f32.gmra.mxu0 %v338_v50  ;;  %803 = vmatmul.mubr.f32.gmra.mxu1 %v338_v50 }
  0x7e   : > { %1692 = vmatpush3.msra.mxu1 %v361_v47  ;;  %1620 = vmatpush3.msra.mxu0 %v356_v51 }
  0x7f   : > { %1677 = vmatprep.subr.mxu1 %v436_v49  ;;  %1621 = vmatprep.subr.mxu0 %v431_v52 }
  0x80   : > { %665 = vmatprep.mubr.f32.mxu0 %v341_v53  ;;  %808 = vmatprep.mubr.f32.mxu1 %v341_v53 }
  0x81   : > { %1693 = vmatpush3.msra.mxu1 %v356_v51  ;;  %1622 = vmatpush3.msra.mxu0 %v351_v54 }
  0x82   : > { %666 = vmatmul.mubr.f32.gmra.mxu0 %v340_v55  ;;  %809 = vmatmul.mubr.f32.gmra.mxu1 %v340_v55 }
  0x83   : > { %1678 = vmatprep.subr.mxu1 %v431_v52  ;;  %1623 = vmatprep.subr.mxu0 %v426_v56 }
  0x84   : > { %1694 = vmatpush3.msra.mxu1 %v351_v54  ;;  %1624 = vmatpush3.msra.mxu0 %v346_v57 }
  0x85   : > { %1679 = vmatprep.subr.mxu1 %v426_v56  ;;  %879 = vmatprep.mubr.f32.mxu0 %v2413_v63  ;;  %v510_v63 = vsub.s32 1, %v2637_v59 }
  0x86   : > { %1695 = vmatpush3.msra.mxu1 %v346_v57  ;;  %914 = vmatprep.mubr.f32.mxu1 %v2536_v31 }
  0x87   : > { %880 = vmatmul.mubr.f32.vlgmr.msra.gmra.mxu0 %v2419_v1  ;;  %915 = vmatmul.mubr.f32.vlgmr.msra.gmra.mxu1 %v2543_v33  ;;  %v2651_v1 = vrot.slane %v2644_v62, %v514_v61  ;;  %v2654_v2 = vrot.slane %v2644_v62, %v510_v63 }
  0x88   : > { %884 = vmatprep.mubr.f32.mxu0 %v2426_v3  ;;  %919 = vmatprep.mubr.f32.mxu1 %v2552_v35 }
  0x8b   : > { %885 = vmatmul.mubr.f32.gmra.mxu0 %v2439_v6  ;;  %920 = vmatmul.mubr.f32.gmra.mxu1 %v2559_v37 }
  0x8c   : > { %889 = vmatprep.mubr.f32.mxu0 %v2446_v8  ;;  %924 = vmatprep.mubr.f32.mxu1 %v2570_v40 }
  0x8f   : > { %890 = vmatmul.mubr.f32.gmra.mxu0 %v2454_v10  ;;  %925 = vmatmul.mubr.f32.gmra.mxu1 %v2575_v41 }
  0x90   : > { %894 = vmatprep.mubr.f32.mxu0 %v2465_v13  ;;  %929 = vmatprep.mubr.f32.mxu1 %v337_v44  ;;  %v2661_v13 = vrot.slane %v2644_v62, %v518_v5 }
  0x93   : > { %895 = vmatmul.mubr.f32.gmra.mxu0 %v2473_v15  ;;  %930 = vmatmul.mubr.f32.gmra.mxu1 %v336_v46 }
  0x94   : > { %899 = vmatprep.mubr.f32.mxu0 %v2485_v18  ;;  %934 = vmatprep.mubr.f32.mxu1 %v339_v48 }
  0x97   : > { %900 = vmatmul.mubr.f32.gmra.mxu0 %v2489_v19  ;;  %935 = vmatmul.mubr.f32.gmra.mxu1 %v338_v50 }
  0x98   : > { %904 = vmatprep.mubr.f32.mxu0 %v2502_v22  ;;  %939 = vmatprep.mubr.f32.mxu1 %v341_v53 }
  0x9b   : > { %905 = vmatmul.mubr.f32.gmra.mxu0 %v2505_v23  ;;  %940 = vmatmul.mubr.f32.gmra.mxu1 %v340_v55 }
  0x9c   : > { %909 = vmatprep.mubr.f32.mxu0 %v2518_v26 }
  0x9f   : > { %910 = vmatmul.mubr.f32.gmra.mxu0 %v2524_v28 }
 0x10d   : > { %v595_v3 = vpop.f32.mrf.mxu0  ;;  %v738_v4 = vpop.f32.mrf.mxu1 }
 0x10e   : > { %v596_v6 = vadd.f32 %v595_v3, %v2648_v0  ;;  %v739_v7 = vadd.f32 %v738_v4, %v2651_v1 }
 0x10f   : > { %v597_v8 = vpop.f32.mrf.mxu0  ;;  %v740_v9 = vpop.f32.mrf.mxu1 }
 0x110   : > { %v1538_v10 = vmul.f32 -1.442695, %v596_v6  ;;  %v1564_v11 = vmul.f32 -1.442695, %v739_v7  ;;  %v598_v12 = vadd.f32 %v597_v8, %v2654_v2  ;;  %v741_v24 = vadd.f32 %v740_v9, %v2661_v13 }
 0x111   : > { %v601_v14 = vpop.f32.mrf.mxu0  ;;  %v744_v15 = vpop.f32.mrf.mxu1 }
 0x112   : > { %1704 = vpow2.f32 %v1538_v10  ;;  %v1551_v16 = vmul.f32 -1.442695, %v598_v12  ;;  %v602_v17 = vadd.f32 %v601_v14, %v2648_v0  ;;  %v745_v18 = vadd.f32 %v744_v15, %v2651_v1 }
 0x113   : > { %1706 = vpow2.f32 %v1564_v11  ;;  %v603_v19 = vpop.f32.mrf.mxu0  ;;  %v746_v20 = vpop.f32.mrf.mxu1 }
 0x114   : > { %1708 = vpow2.f32 %v1551_v16  ;;  %v1539_v21 = vmul.f32 -1.442695, %v602_v17  ;;  %v1565_v22 = vmul.f32 -1.442695, %v745_v18  ;;  %v604_v23 = vadd.f32 %v603_v19, %v2654_v2 }
 0x115   : > { %v607_v25 = vpop.f32.mrf.mxu0  ;;  %v750_v26 = vpop.f32.mrf.mxu1  ;;  %v747_v35 = vadd.f32 %v746_v20, %v2661_v13 }
 0x116   : > { %1710 = vpow2.f32 %v1539_v21  ;;  %v1552_v27 = vmul.f32 -1.442695, %v604_v23  ;;  %v608_v28 = vadd.f32 %v607_v25, %v2648_v0  ;;  %v751_v29 = vadd.f32 %v750_v26, %v2651_v1 }
 0x117   : > { %1712 = vpow2.f32 %v1565_v22  ;;  %v609_v30 = vpop.f32.mrf.mxu0  ;;  %v752_v31 = vpop.f32.mrf.mxu1 }
 0x118   : > { %1714 = vpow2.f32 %v1552_v27  ;;  %v1540_v32 = vmul.f32 -1.442695, %v608_v28  ;;  %v1566_v33 = vmul.f32 -1.442695, %v751_v29  ;;  %v610_v34 = vadd.f32 %v609_v30, %v2654_v2 }
 0x119   : > { %1716 = vtanh.f32 %v741_v24  ;;  %v756_v36 = vpop.f32.mrf.mxu1  ;;  %v753_v42 = vadd.f32 %v752_v31, %v2661_v13 }
 0x11a   : > { %1718 = vpow2.f32 %v1540_v32  ;;  %v1553_v37 = vmul.f32 -1.442695, %v610_v34  ;;  %v613_v38 = vpop.f32.mrf.mxu0  ;;  %v757_v39 = vadd.f32 %v756_v36, %v2651_v1 }
 0x11b   : > { %1720 = vpow2.f32 %v1566_v33  ;;  %v614_v40 = vadd.f32 %v613_v38, %v2648_v0  ;;  %v2673_v41 = vpop.f32.mrf.mxu1 }
 0x11c   : > { %1722 = vpow2.f32 %v1553_v37  ;;  %v1567_v43 = vmul.f32 -1.442695, %v757_v39  ;;  %v615_v44 = vpop.f32.mrf.mxu0  ;;  %v759_v34 = vadd.f32 %v2673_v41, %v2661_v13 }
 0x11d   : > { %1724 = vtanh.f32 %v747_v35  ;;  %v1541_v45 = vmul.f32 -1.442695, %v614_v40  ;;  %v616_v46 = vadd.f32 %v615_v44, %v2654_v2 }
 0x11e   : > { %1726 = vpow2.f32 %v1567_v43  ;;  %v619_v47 = vpop.f32.mrf.mxu0  ;;  %v762_v48 = vpop.f32.mrf.mxu1 }
 0x11f   : > { %v1705_v49 = vpop.eup %1704  ;;  %1728 = vpow2.f32 %v1541_v45  ;;  %v1554_v50 = vmul.f32 -1.442695, %v616_v46  ;;  %v620_v51 = vadd.f32 %v619_v47, %v2648_v0  ;;  %v763_v60 = vadd.f32 %v762_v48, %v2651_v1  ;;  %v1322_v45 = vld [vmem:[%s2699_s23] sm:$0xff] }
 0x120   : > { %v1707_v52 = vpop.eup %1706  ;;  %v984_v53 = vadd.f32 1.0, %v1705_v49  ;;  %1730 = vtanh.f32 %v753_v42  ;;  %v621_v54 = vpop.f32.mrf.mxu0  ;;  %v1283_v46 = vld [vmem:[%s2705_s26] sm:$0xff] }
 0x121   : > { %v2678_v55 = vpop.f32.mrf.mxu1  ;;  %v1709_v56 = vpop.eup %1708  ;;  %v1140_v57 = vadd.f32 1.0, %v1707_v52  ;;  %1732 = vpow2.f32 %v1554_v50  ;;  %v1542_v58 = vmul.f32 -1.442695, %v620_v51  ;;  %v1568_v11 = vmul.f32 -1.442695, %v763_v60 }
 0x122   : > { %1734 = vrcp.f32 %v984_v53  ;;  %v1062_v61 = vadd.f32 1.0, %v1709_v56  ;;  %v625_v63 = vpop.f32.mrf.mxu0  ;;  %v622_v12 = vadd.f32 %v621_v54, %v2654_v2 }
 0x123   : > { %v768_v3 = vpop.f32.mrf.mxu1  ;;  %v1711_v4 = vpop.eup %1710  ;;  %1736 = vrcp.f32 %v1140_v57  ;;  %v626_v28 = vadd.f32 %v625_v63, %v2648_v0 }
 0x124   : > { %v1713_v5 = vpop.eup %1712  ;;  %1738 = vrcp.f32 %v1062_v61  ;;  %v985_v6 = vadd.f32 1.0, %v1711_v4  ;;  %v627_v7 = vpop.f32.mrf.mxu0  ;;  %v1555_v24 = vmul.f32 -1.442695, %v622_v12  ;;  %v769_v30 = vadd.f32 %v768_v3, %v2651_v1  ;;  %v1323_v4 = vld [vmem:[%s2699_s23 + $0x8] sm:$0xff] }
 0x125   : > { %v2681_v8 = vpop.f32.mrf.mxu1  ;;  %v1715_v9 = vpop.eup %1714  ;;  %v1141_v10 = vadd.f32 1.0, %v1713_v5  ;;  %1740 = vpow2.f32 %v1542_v58  ;;  %v628_v35 = vadd.f32 %v627_v7, %v2654_v2  ;;  %v1543_v42 = vmul.f32 -1.442695, %v626_v28  ;;  %v1284_v5 = vld [vmem:[%s2705_s26 + $0x8] sm:$0xff]  ;;  %v1285_v28 = vld [vmem:[%s2705_s26 + $0x10] sm:$0xff] }
 0x126   : > { %v1717_v14 = vpop.eup %1716  ;;  %1742 = vrcp.f32 %v985_v6  ;;  %v1063_v15 = vadd.f32 1.0, %v1715_v9  ;;  %v631_v16 = vpop.f32.mrf.mxu0  ;;  %v1569_v41 = vmul.f32 -1.442695, %v769_v30 }
 0x127   : > { %v1719_v17 = vpop.eup %1718  ;;  %1744 = vrcp.f32 %v1141_v10  ;;  %v774_v18 = vpop.f32.mrf.mxu1  ;;  %v632_v48 = vadd.f32 %v631_v16, %v2648_v0  ;;  %v1556_v50 = vmul.f32 -1.442695, %v628_v35 }
 0x128   : > { %v1721_v19 = vpop.eup %1720  ;;  %1746 = vrcp.f32 %v1063_v15  ;;  %v986_v20 = vadd.f32 1.0, %v1719_v17  ;;  %v633_v21 = vpop.f32.mrf.mxu0  ;;  %v775_v54 = vadd.f32 %v774_v18, %v2651_v1 }
 0x129   : > { %v1723_v22 = vpop.eup %1722  ;;  %v1142_v23 = vadd.f32 1.0, %v1721_v19  ;;  %1748 = vpow2.f32 %v1568_v11  ;;  %v2687_v25 = vpop.f32.mrf.mxu1  ;;  %v1544_v6 = vmul.f32 -1.442695, %v632_v48  ;;  %v634_v7 = vadd.f32 %v633_v21, %v2654_v2 }
 0x12a   : > { %v2689_v26 = vpop.eup %1724  ;;  %1750 = vrcp.f32 %v986_v20  ;;  %v1064_v27 = vadd.f32 1.0, %v1723_v22  ;;  %v1570_v16 = vmul.f32 -1.442695, %v775_v54  ;;  %v1286_v54 = vld [vmem:[%s2705_s26 + $0x18] sm:$0xff] }
 0x12b   : > { %v1727_v29 = vpop.eup %1726  ;;  %1752 = vrcp.f32 %v1142_v23  ;;  %v2693_v31 = vpop.f32.mrf.mxu1  ;;  %v1557_v30 = vmul.f32 -1.442695, %v634_v7 }
 0x12c   : > { %v1729_v32 = vpop.eup %1728  ;;  %1754 = vrcp.f32 %v1064_v27  ;;  %v1143_v33 = vadd.f32 1.0, %v1727_v29  ;;  %v637_v36 = vpop.f32.mrf.mxu0  ;;  %v1324_v27 = vld [vmem:[%s2699_s23 + $0x10] sm:$0xff] }
 0x12d   : > { %v2710_v37 = vpop.eup %1730  ;;  %v987_v38 = vadd.f32 1.0, %v1729_v32  ;;  %1756 = vpow2.f32 %v1555_v24  ;;  %v2712_v39 = vpop.f32.mrf.mxu1  ;;  %v638_v32 = vadd.f32 %v637_v36, %v2648_v0 }
 0x12e   : > { %v1733_v40 = vpop.eup %1732  ;;  %1758 = vrcp.f32 %v1143_v33  ;;  %v2714_v43 = vpop.f32.mrf.mxu0 }
 0x12f   : > { %v1735_v44 = vpop.eup %1734  ;;  %1760 = vrcp.f32 %v987_v38  ;;  %v1065_v47 = vadd.f32 1.0, %v1733_v40 }
 0x130   : > { %v1737_v49 = vpop.eup %1736  ;;  %1762 = vtanh.f32 %v759_v34  ;;  %v2719_v51 = vpop.f32.mrf.mxu0  ;;  %v1270_v58 = vmul.f32 %v1735_v44, %v1717_v14 }
 0x131   : > { %v2721_v52 = vpop.f32.mrf.mxu1  ;;  %v1739_v53 = vpop.eup %1738  ;;  %1764 = vrcp.f32 %v1065_v47  ;;  %v1335_v57 = vmul.f32 %v1737_v49, %v1322_v45 }
 0x132   : > { %v1741_v56 = vpop.eup %1740  ;;  %v1296_v60 = vmul.f32 %v1739_v53, %v1283_v46  ;;  %1766 = vpow2.f32 %v1543_v42  ;;  %v2724_v61 = vpop.f32.mrf.mxu0  ;;  %v781_v42 = vadd.f32 %v2693_v31, %v2651_v1  ;;  %v1325_v53 = vld [vmem:[%s2699_s23 + $0x18] sm:$0xff] }
 0x133   : > { %v2726_v63 = vpop.f32.mrf.mxu1  ;;  %v1743_v3 = vpop.eup %1742  ;;  %1768 = vpow2.f32 %v1569_v41  ;;  %v988_v11 = vadd.f32 1.0, %v1741_v56  ;;  %v771_v56 = vadd.f32 %v2681_v8, %v2661_v13 }
 0x134   : > { %v1745_v9 = vpop.eup %1744  ;;  %v1309_v10 = vadd.f32 %v1296_v60, %v1270_v58  ;;  %1770 = vpow2.f32 %v1556_v50  ;;  %v2731_v12 = vpop.f32.mrf.mxu0  ;;  %v1271_v20 = vmul.f32 %v1743_v3, %v2689_v26  ;;  %v765_v26 = vadd.f32 %v2678_v55, %v2661_v13 }
 0x135   : > { %v2733_v14 = vpop.f32.mrf.mxu1  ;;  %v1747_v15 = vpop.eup %1746  ;;  %v1336_v19 = vmul.f32 %v1745_v9, %v1323_v4  ;;  %1772 = vpow2.f32 %v1544_v6  ;;  %v1571_v58 = vmul.f32 -1.442695, %v781_v42  ;;  %v640_v6 = vadd.f32 %v2714_v43, %v2654_v2 }
 0x136   : > { %v1749_v17 = vpop.eup %1748  ;;  %v2741_v18 = vadd.f32 %v1335_v57, %v1309_v10  ;;  %v1297_v21 = vmul.f32 %v1747_v15, %v1284_v5  ;;  %v2744_v22 = vpop.f32.mrf.mxu0  ;;  %1774 = vrcp.f32 %v988_v11  ;;  %v644_v43 = vadd.f32 %v2719_v51, %v2648_v0 }
 0x137   : > { %v2746_v23 = vpop.f32.mrf.mxu1  ;;  %v1751_v24 = vpop.eup %1750  ;;  %v1144_v29 = vadd.f32 1.0, %v1749_v17  ;;  %v787_v51 = vadd.f32 %v2721_v52, %v2651_v1  ;;  %v1326_v52 = vld [vmem:[%s2699_s23 + $0x20] sm:$0xff] }
 0x138   : > { %v1753_v33 = vpop.eup %1752  ;;  %1400 = vst [vmem:[%s2739_s30] sm:$0xff] %v2741_v18  ;;  %v1310_v34 = vadd.f32 %v1297_v21, %v1271_v20  ;;  %v2755_v35 = vpop.f32.mrf.mxu0  ;;  %v1272_v40 = vmul.f32 %v1751_v24, %v2710_v37  ;;  %v1545_v37 = vmul.f32 -1.442695, %v638_v32 }
 0x139   : > { %v1755_v38 = vpop.eup %1754  ;;  %1776 = vrcp.f32 %v1144_v29  ;;  %v2760_v36 = vpop.f32.mrf.mxu1  ;;  %v1337_v46 = vmul.f32 %v1753_v33, %v1324_v27  ;;  %v1558_v27 = vmul.f32 -1.442695, %v640_v6 }
 0x13a   : > { %v1757_v44 = vpop.eup %1756  ;;  %v2762_v45 = vadd.f32 %v1336_v19, %v1310_v34  ;;  %v1298_v47 = vmul.f32 %v1755_v38, %v1285_v28  ;;  %1778 = vpow2.f32 %v1570_v16  ;;  %v2764_v55 = vpop.f32.mrf.mxu0  ;;  %v1546_v38 = vmul.f32 -1.442695, %v644_v43 }
 0x13b   : > { %v1759_v41 = vpop.eup %1758  ;;  %v1066_v48 = vadd.f32 1.0, %v1757_v44  ;;  %1780 = vpow2.f32 %v1557_v30  ;;  %v2766_v49 = vpop.f32.mrf.mxu1  ;;  %v777_v30 = vadd.f32 %v2687_v25, %v2661_v13 }
 0x13c   : > { %v1761_v50 = vpop.eup %1760  ;;  %1401 = vst [vmem:[%s2739_s30 + $0x8] sm:$0xff] %v2762_v45  ;;  %v1311_v31 = vadd.f32 %v1298_v47, %v1272_v40  ;;  %1782 = vtanh.f32 %v765_v26  ;;  %v1338_v9 = vmul.f32 %v1759_v41, %v1325_v53  ;;  %v646_v40 = vadd.f32 %v2724_v61, %v2654_v2  ;;  %v1287_v41 = vld [vmem:[%s2705_s26 + $0x20] sm:$0xff] }
 0x13d   : > { %v1763_v57 = vpop.eup %1762  ;;  %1784 = vrcp.f32 %v1066_v48  ;;  %v2774_v60 = vpop.f32.mrf.mxu0 }
 0x13e   : > { %v2776_v3 = vpop.f32.mrf.mxu1  ;;  %v1765_v4 = vpop.eup %1764  ;;  %v2778_v5 = vadd.f32 %v1337_v46, %v1311_v31  ;;  %v1273_v10 = vmul.f32 %v1763_v57, %v1761_v50  ;;  %1786 = vpow2.f32 %v1545_v37  ;;  %v1572_v37 = vmul.f32 -1.442695, %v787_v51 }
 0x13f   : > { %v1767_v7 = vpop.eup %1766  ;;  %v1299_v11 = vmul.f32 %v1765_v4, %v1286_v54  ;;  %v2782_v8 = vpop.f32.mrf.mxu0  ;;  %1788 = vtanh.f32 %v771_v56  ;;  %v650_v50 = vadd.f32 %v2731_v12, %v2648_v0  ;;  %v1559_v61 = vmul.f32 -1.442695, %v646_v40 }
 0x140   : > { %v1769_v15 = vpop.eup %1768  ;;  %1402 = vst [vmem:[%s2739_s30 + $0x10] sm:$0xff] %v2778_v5  ;;  %v989_v16 = vadd.f32 1.0, %v1767_v7  ;;  %1790 = vpow2.f32 %v1571_v58  ;;  %v2788_v21 = vpop.f32.mrf.mxu1  ;;  %v793_v57 = vadd.f32 %v2733_v14, %v2651_v1 }
 0x141   : > { %v1771_v17 = vpop.eup %1770  ;;  %v1312_v19 = vadd.f32 %v1299_v11, %v1273_v10  ;;  %v1145_v20 = vadd.f32 1.0, %v1769_v15  ;;  %v1547_v12 = vmul.f32 -1.442695, %v650_v50  ;;  %v652_v10 = vadd.f32 %v2744_v22, %v2654_v2 }
 0x142   : > { %1792 = vrcp.f32 %v989_v16  ;;  %v1067_v24 = vadd.f32 1.0, %v1771_v17  ;;  %v2790_v28 = vpop.f32.mrf.mxu0  ;;  %v1773_v32 = vpop.eup %1772  ;;  %v656_v22 = vadd.f32 %v2755_v35, %v2648_v0 }
 0x143   : > { %v2792_v29 = vadd.f32 %v1338_v9, %v1312_v19  ;;  %1794 = vrcp.f32 %v1145_v20  ;;  %v1775_v34 = vpop.eup %1774  ;;  %v990_v26 = vadd.f32 1.0, %v1773_v32  ;;  %v2804_v42 = vpop.f32.mrf.mxu1  ;;  %v1573_v19 = vmul.f32 -1.442695, %v793_v57  ;;  %v1289_v57 = vld [vmem:[%s2705_s26 + $0x30] sm:$0xff] }
 0x144   : > { %1796 = vrcp.f32 %v1067_v24  ;;  %v2798_v33 = vpop.f32.mrf.mxu0  ;;  %v1327_v24 = vld [vmem:[%s2699_s23 + $0x28] sm:$0xff] }
 0x145   : > { %1403 = vst [vmem:[%s2739_s30 + $0x18] sm:$0xff] %v2792_v29  ;;  %1798 = vpow2.f32 %v1558_v27  ;;  %v2812_v54 = vpop.f32.mrf.mxu1  ;;  %v1288_v27 = vld [vmem:[%s2705_s26 + $0x28] sm:$0xff] }
 0x146   : > { %v1777_v25 = vpop.eup %1776  ;;  %1800 = vtanh.f32 %v777_v30 }
 0x147   : > { %v1779_v44 = vpop.eup %1778  ;;  %v2806_v46 = vpop.f32.mrf.mxu0  ;;  %1802 = vrcp.f32 %v990_v26  ;;  %v1339_v58 = vmul.f32 %v1777_v25, %v1326_v52  ;;  %v658_v52 = vadd.f32 %v2764_v55, %v2654_v2 }
 0x148   : > { %v1781_v47 = vpop.eup %1780  ;;  %v1146_v48 = vadd.f32 1.0, %v1779_v44  ;;  %1804 = vpow2.f32 %v1546_v38  ;;  %v2820_v17 = vpop.f32.mrf.mxu1 }
 0x149   : > { %v1783_v31 = vpop.eup %1782  ;;  %v1068_v53 = vadd.f32 1.0, %v1781_v47  ;;  %v2816_v7 = vpop.f32.mrf.mxu0  ;;  %v1548_v47 = vmul.f32 -1.442695, %v656_v22 }
 0x14a   : > { %v1785_v56 = vpop.eup %1784  ;;  %1806 = vrcp.f32 %v1146_v48  ;;  %v1274_v4 = vmul.f32 %v1783_v31, %v1775_v34  ;;  %v1560_v34 = vmul.f32 -1.442695, %v652_v10  ;;  %v2838_v38 = vpop.f32.mrf.mxu1 }
 0x14b   : > { %v1300_v6 = vmul.f32 %v1785_v56, %v1287_v41  ;;  %1808 = vrcp.f32 %v1068_v53  ;;  %v1787_v9 = vpop.eup %1786  ;;  %v2830_v32 = vpop.f32.mrf.mxu0  ;;  %v1328_v56 = vld [vmem:[%s2699_s23 + $0x30] sm:$0xff] }
 0x14c   : > { %1810 = vpow2.f32 %v1572_v37  ;;  %v1789_v11 = vpop.eup %1788  ;;  %v991_v16 = vadd.f32 1.0, %v1787_v9  ;;  %v2846_v31 = vpop.f32.mrf.mxu1 }
 0x14d   : > { %v1313_v15 = vadd.f32 %v1300_v6, %v1274_v4  ;;  %1812 = vpow2.f32 %v1559_v61  ;;  %v1791_v14 = vpop.eup %1790  ;;  %v2842_v41 = vpop.f32.mrf.mxu0  ;;  %v1561_v6 = vmul.f32 -1.442695, %v658_v52 }
 0x14e   : > { %1814 = vtanh.f32 %v2741_v18  ;;  %v1147_v30 = vadd.f32 1.0, %v1791_v14  ;;  %v783_v18 = vadd.f32 %v2712_v39, %v2661_v13  ;;  %v2858_v14 = vpop.f32.mrf.mxu1 }
 0x14f   : > { %v1793_v20 = vpop.eup %1792  ;;  %1816 = vtanh.f32 %v2762_v45  ;;  %v2824_v43 = vadd.f32 %v1339_v58, %v1313_v15  ;;  %v799_v45 = vadd.f32 %v2760_v36, %v2651_v1  ;;  %v789_v36 = vadd.f32 %v2726_v63, %v2661_v13  ;;  %v2852_v9 = vpop.f32.mrf.mxu0 }
 0x150   : > { %v1795_v51 = vpop.eup %1794  ;;  %1818 = vpow2.f32 %v1547_v12  ;;  %v1275_v25 = vmul.f32 %v1793_v20, %v1789_v11  ;;  %v662_v12 = vadd.f32 %v2774_v60, %v2648_v0  ;;  %v795_v60 = vadd.f32 %v2746_v23, %v2661_v13  ;;  %v2875_v23 = vpop.f32.mrf.mxu1 }
 0x151   : > { %v1797_v26 = vpop.eup %1796  ;;  %1404 = vst [vmem:[%s2739_s30 + $0x20] sm:$0xff] %v2824_v43  ;;  %1820 = vrcp.f32 %v991_v16  ;;  %v1340_v40 = vmul.f32 %v1795_v51, %v1327_v24  ;;  %v1574_v55 = vmul.f32 -1.442695, %v799_v45  ;;  %v805_v24 = vadd.f32 %v2776_v3, %v2651_v1  ;;  %v2866_v51 = vpop.f32.mrf.mxu0 }
 0x152   : > { %v1301_v35 = vmul.f32 %v1797_v26, %v1288_v27  ;;  %1822 = vrcp.f32 %v1147_v30  ;;  %v1799_v44 = vpop.eup %1798  ;;  %v522_v26 = vsub.s32 4, %v2637_v59  ;;  %v1549_v3 = vmul.f32 -1.442695, %v662_v12 }
 0x153   : > { %1824 = vpow2.f32 %v1573_v19  ;;  %v1801_v39 = vpop.eup %1800  ;;  %v1069_v37 = vadd.f32 1.0, %v1799_v44  ;;  %v1575_v44 = vmul.f32 -1.442695, %v805_v24  ;;  %v668_v59 = vadd.f32 %v2790_v28, %v2648_v0  ;;  %v2882_v52 = vpop.f32.mrf.mxu0 }
 0x154   : > { %v1314_v48 = vadd.f32 %v1301_v35, %v1275_v25  ;;  %1826 = vpow2.f32 %v1560_v34  ;;  %v1803_v50 = vpop.eup %1802  ;;  %v801_v28 = vadd.f32 %v2766_v49, %v2661_v13 }
 0x155   : > { %1828 = vtanh.f32 %v783_v18  ;;  %v1805_v53 = vpop.eup %1804  ;;  %v1276_v15 = vmul.f32 %v1803_v50, %v1801_v39 }
 0x156   : > { %v2848_v61 = vadd.f32 %v1340_v40, %v1314_v48  ;;  %1830 = vrcp.f32 %v1069_v37  ;;  %v992_v4 = vadd.f32 1.0, %v1805_v53  ;;  %v664_v40 = vadd.f32 %v2782_v8, %v2654_v2  ;;  %v1329_v37 = vld [vmem:[%s2699_s23 + $0x38] sm:$0xff] }
 0x157   : > { %v1807_v58 = vpop.eup %1806  ;;  %1832 = vpow2.f32 %v1548_v47  ;;  %v2885_v8 = vrot.slane %v2644_v62, %v522_v26  ;;  %v811_v53 = vadd.f32 %v2804_v42, %v2651_v1  ;;  %v1627_v62 = vadd.f32 %v2816_v7, %v2806_v46 }
 0x158   : > { %v1809_v63 = vpop.eup %1808  ;;  %1405 = vst [vmem:[%s2739_s30 + $0x28] sm:$0xff] %v2848_v61  ;;  %1834 = vtanh.f32 %v789_v36  ;;  %v1341_v11 = vmul.f32 %v1807_v58, %v1328_v56  ;;  %v1290_v36 = vld [vmem:[%s2705_s26 + $0x38] sm:$0xff]  ;;  %v1562_v50 = vmul.f32 -1.442695, %v664_v40  ;;  %v2891_v56 = vpop.f32.mrf.mxu1  ;;  %v1550_v58 = vmul.f32 -1.442695, %v668_v59 }
 0x159   : > { %v1811_v10 = vpop.eup %1810  ;;  %v1302_v16 = vmul.f32 %v1809_v63, %v1289_v57  ;;  %1836 = vrcp.f32 %v992_v4  ;;  %v1648_v4 = vadd.f32 %v2838_v38, %v2820_v17  ;;  %v670_v46 = vadd.f32 %v2798_v33, %v2654_v2 }
 0x15a   : > { %v1813_v19 = vpop.eup %1812  ;;  %v1148_v20 = vadd.f32 1.0, %v1811_v10  ;;  %1838 = vpow2.f32 %v1574_v55  ;;  %v2903_v7 = vpop.f32.mrf.mxu1  ;;  %v882_v38 = vadd.f32 %v1627_v62, %v2885_v8  ;;  %v1630_v2 = vadd.f32 %v2842_v41, %v2830_v32  ;;  %v1292_v62 = vld [vmem:[%s2705_s26 + $0x48] sm:$0xff] }
 0x15b   : > { %v2862_v27 = vpop.eup %1814  ;;  %v1315_v30 = vadd.f32 %v1302_v16, %v1276_v15  ;;  %v1070_v22 = vadd.f32 1.0, %v1813_v19  ;;  %1840 = vpow2.f32 %v1561_v6  ;;  %v2899_v6 = vpop.f32.mrf.mxu0  ;;  %v917_v19 = vadd.f32 %v1648_v4, %v2885_v8 }
 0x15c   : > { %v2868_v34 = vpop.eup %1816  ;;  %1842 = vrcp.f32 %v1148_v20  ;;  %v1651_v40 = vadd.f32 %v2858_v14, %v2846_v31  ;;  %v1633_v59 = vadd.f32 %v2866_v51, %v2852_v9  ;;  %v887_v14 = vadd.f32 %v1630_v2, %v2885_v8 }
 0x15d   : > { %v1819_v18 = vpop.eup %1818  ;;  %v2871_v45 = vadd.f32 %v1341_v11, %v1315_v30  ;;  %1844 = vrcp.f32 %v1070_v22  ;;  %v1576_v11 = vmul.f32 -1.442695, %v811_v53  ;;  %v2907_v20 = vpop.f32.mrf.mxu0  ;;  %v1330_v22 = vld [vmem:[%s2699_s23 + $0x40] sm:$0xff]  ;;  %v1654_v53 = vadd.f32 %v2891_v56, %v2875_v23 }
 0x15e   : > { %v1821_v25 = vpop.eup %1820  ;;  %1846 = vtanh.f32 %v2778_v5  ;;  %v993_v35 = vadd.f32 1.0, %v1819_v18 }
 0x15f   : > { %v1823_v47 = vpop.eup %1822  ;;  %1406 = vst [vmem:[%s2739_s30 + $0x30] sm:$0xff] %v2871_v45  ;;  %1848 = vtanh.f32 %v795_v60  ;;  %v1291_v60 = vld [vmem:[%s2705_s26 + $0x40] sm:$0xff] }
 0x160   : > { %v1825_v39 = vpop.eup %1824  ;;  %1850 = vrcp.f32 %v993_v35  ;;  %v1342_v42 = vmul.f32 %v1823_v47, %v1329_v37  ;;  %v1577_v47 = vmul.f32 -1.442695, %v882_v38  ;;  %v1638_v37 = vpop.f32.mrf.mxu0 }
 0x161   : > { %v1827_v48 = vpop.eup %1826  ;;  %v1149_v5 = vadd.f32 1.0, %v1825_v39  ;;  %1852 = vpow2.f32 %v1549_v3  ;;  %v1563_v3 = vmul.f32 -1.442695, %v670_v46 }
 0x162   : > { %v1829_v57 = vpop.eup %1828  ;;  %v1071_v0 = vadd.f32 1.0, %v1827_v48  ;;  %1854 = vpow2.f32 %v1575_v44  ;;  %v807_v44 = vadd.f32 %v2788_v21, %v2661_v13  ;;  %v1640_v4 = vpop.f32.mrf.mxu0 }
 0x163   : > { %v1831_v55 = vpop.eup %1830  ;;  %1856 = vrcp.f32 %v1149_v5  ;;  %v1277_v63 = vmul.f32 %v1829_v57, %v1821_v25  ;;  %v1656_v25 = vpop.f32.mrf.mxu1  ;;  %v922_v5 = vadd.f32 %v1651_v40, %v2885_v8 }
 0x164   : > { %v1833_v1 = vpop.eup %1832  ;;  %v1303_v12 = vmul.f32 %v1831_v55, %v1290_v36  ;;  %1858 = vrcp.f32 %v1071_v0 }
 0x165   : > { %v1835_v10 = vpop.eup %1834  ;;  %v994_v49 = vadd.f32 1.0, %v1833_v1  ;;  %1860 = vpow2.f32 %v1562_v50  ;;  %v1658_v9 = vpop.f32.mrf.mxu1  ;;  %v1585_v23 = vmul.f32 -1.442695, %v922_v5 }
 0x166   : > { %v1837_v15 = vpop.eup %1836  ;;  %v1316_v17 = vadd.f32 %v1303_v12, %v1277_v63  ;;  %1862 = vtanh.f32 %v801_v28  ;;  %v1331_v28 = vld [vmem:[%s2699_s23 + $0x48] sm:$0xff]  ;;  %v1578_v63 = vmul.f32 -1.442695, %v887_v14  ;;  %v1636_v12 = vadd.f32 %v2899_v6, %v2882_v52 }
 0x167   : > { %v1839_v16 = vpop.eup %1838  ;;  %1864 = vrcp.f32 %v994_v49  ;;  %v1278_v39 = vmul.f32 %v1837_v15, %v1835_v10  ;;  %v1659_v56 = vpop.f32.mrf.mxu1  ;;  %v1657_v15 = vadd.f32 %v1656_v25, %v2903_v7  ;;  %v1639_v7 = vadd.f32 %v1638_v37, %v2907_v20 }
 0x168   : > { %v1841_v24 = vpop.eup %1840  ;;  %v1355_v30 = vadd.f32 %v1342_v42, %v1316_v17  ;;  %v1150_v26 = vadd.f32 1.0, %v1839_v16  ;;  %1866 = vpow2.f32 %v1550_v58  ;;  %v892_v58 = vadd.f32 %v1633_v59, %v2885_v8 }
 0x169   : > { %v1843_v33 = vpop.eup %1842  ;;  %v1072_v18 = vadd.f32 1.0, %v1841_v24  ;;  %1868 = vpow2.f32 %v1576_v11  ;;  %v1641_v24 = vpop.f32.mrf.mxu0  ;;  %v932_v40 = vadd.f32 %v1657_v15, %v2885_v8 }
 0x16a   : > { %v1845_v35 = vpop.eup %1844  ;;  %1870 = vtanh.f32 %v2792_v29  ;;  %1407 = vst [vmem:[%s2739_s30 + $0x38] sm:$0xff] %v1355_v30  ;;  %v1343_v41 = vmul.f32 %v1843_v33, %v1330_v22  ;;  %v1584_v29 = vmul.f32 -1.442695, %v917_v19  ;;  %v1579_v16 = vmul.f32 -1.442695, %v892_v58  ;;  %v1661_v2 = vpop.f32.mrf.mxu1 }
 0x16b   : > { %v2921_v32 = vpop.eup %1846  ;;  %v1304_v48 = vmul.f32 %v1845_v35, %v1291_v60  ;;  %1872 = vrcp.f32 %v1150_v26  ;;  %v927_v19 = vadd.f32 %v1654_v53, %v2885_v8  ;;  %v897_v22 = vadd.f32 %v1636_v12, %v2885_v8  ;;  %v1643_v59 = vpop.f32.mrf.mxu0 }
 0x16c   : > { %v1849_v31 = vpop.eup %1848  ;;  %1874 = vrcp.f32 %v1072_v18  ;;  %v1642_v37 = vadd.f32 %v1641_v24, %v1640_v4 }
 0x16d   : > { %v1851_v36 = vpop.eup %1850  ;;  %v1317_v21 = vadd.f32 %v1304_v48, %v1278_v39  ;;  %1876 = vpow2.f32 %v1563_v3  ;;  %v1580_v20 = vmul.f32 -1.442695, %v897_v22  ;;  %v902_v48 = vadd.f32 %v1639_v7, %v2885_v8 }
 0x16e   : > { %v1853_v51 = vpop.eup %1852  ;;  %v1279_v50 = vmul.f32 %v1851_v36, %v1849_v31  ;;  %1878 = vtanh.f32 %v807_v44  ;;  %v1586_v44 = vmul.f32 -1.442695, %v927_v19  ;;  %v1662_v31 = vpop.f32.mrf.mxu1  ;;  %v907_v4 = vadd.f32 %v1642_v37, %v2885_v8 }
 0x16f   : > { %v1855_v57 = vpop.eup %1854  ;;  %v2927_v0 = vadd.f32 %v1343_v41, %v1317_v21  ;;  %v995_v55 = vadd.f32 1.0, %v1853_v51  ;;  %1880 = vpow2.f32 %v1577_v47  ;;  %v1660_v47 = vadd.f32 %v1659_v56, %v1658_v9 }
 0x170   : > { %v1857_v1 = vpop.eup %1856  ;;  %v1151_v42 = vadd.f32 1.0, %v1855_v57  ;;  %1882 = vpow2.f32 %v1584_v29  ;;  %v1587_v21 = vmul.f32 -1.442695, %v932_v40  ;;  %v1581_v58 = vmul.f32 -1.442695, %v902_v48 }
 0x171   : > { %v1859_v10 = vpop.eup %1858  ;;  %1884 = vtanh.f32 %v1355_v30  ;;  %1408 = vst [vmem:[%s2739_s30 + $0x40] sm:$0xff] %v2927_v0  ;;  %v1344_v11 = vmul.f32 %v1857_v1, %v1331_v28  ;;  %v813_v30 = vadd.f32 %v2812_v54, %v2661_v13  ;;  %v1332_v13 = vld [vmem:[%s2699_s23 + $0x50] sm:$0xff]  ;;  %v937_v9 = vadd.f32 %v1660_v47, %v2885_v8 }
 0x172   : > { %v1861_v49 = vpop.eup %1860  ;;  %v1305_v46 = vmul.f32 %v1859_v10, %v1292_v62  ;;  %1886 = vrcp.f32 %v995_v55  ;;  %v1293_v54 = vld [vmem:[%s2705_s26 + $0x50] sm:$0xff]  ;;  %v1663_v28 = vadd.f32 %v1662_v31, %v1661_v2 }
 0x173   : > { %v1863_v17 = vpop.eup %1862  ;;  %1888 = vrcp.f32 %v1151_v42  ;;  %v1073_v38 = vadd.f32 1.0, %v1861_v49  ;;  %v1333_v49 = vld [vmem:[%s2699_s23 + $0x58] sm:$0xff] }
 0x174   : > { %v1865_v52 = vpop.eup %1864  ;;  %v1318_v6 = vadd.f32 %v1305_v46, %v1279_v50  ;;  %1890 = vpow2.f32 %v1578_v63  ;;  %v1644_v50 = vpop.f32.mrf.mxu0  ;;  %v1294_v46 = vld [vmem:[%s2705_s26 + $0x58] sm:$0xff]  ;;  %v942_v15 = vadd.f32 %v1663_v28, %v2885_v8 }
 0x175   : > { %v1867_v60 = vpop.eup %1866  ;;  %v1280_v26 = vmul.f32 %v1865_v52, %v1863_v17  ;;  %1892 = vrcp.f32 %v1073_v38  ;;  %v1645_v12 = vadd.f32 %v1644_v50, %v1643_v59  ;;  %v1582_v38 = vmul.f32 -1.442695, %v907_v4 }
 0x176   : > { %v1869_v33 = vpop.eup %1868  ;;  %v2942_v18 = vadd.f32 %v1344_v11, %v1318_v6  ;;  %v996_v3 = vadd.f32 1.0, %v1867_v60  ;;  %1894 = vpow2.f32 %v1585_v23  ;;  %v1588_v23 = vmul.f32 -1.442695, %v937_v9 }
 0x177   : > { %v2945_v25 = vpop.eup %1870  ;;  %v1152_v35 = vadd.f32 1.0, %v1869_v33  ;;  %1896 = vpow2.f32 %v1579_v16  ;;  %v912_v24 = vadd.f32 %v1645_v12, %v2885_v8  ;;  %v1589_v60 = vmul.f32 -1.442695, %v942_v15 }
 0x178   : > { %v1873_v41 = vpop.eup %1872  ;;  %1409 = vst [vmem:[%s2739_s30 + $0x48] sm:$0xff] %v2942_v18  ;;  %1898 = vtanh.f32 %v813_v30 }
 0x179   : > { %v1875_v39 = vpop.eup %1874  ;;  %1900 = vrcp.f32 %v996_v3  ;;  %v1345_v14 = vmul.f32 %v1873_v41, %v1332_v13  ;;  %v1583_v3 = vmul.f32 -1.442695, %v912_v24 }
 0x17a   : > { %v1877_v29 = vpop.eup %1876  ;;  %v1306_v36 = vmul.f32 %v1875_v39, %v1293_v54  ;;  %1902 = vrcp.f32 %v1152_v35  ;;  %v1334_v35 = vld [vmem:[%s2699_s23 + $0x60] sm:$0xff] }
 0x17b   : > { %v1879_v5 = vpop.eup %1878  ;;  %v1074_v51 = vadd.f32 1.0, %v1877_v29  ;;  %1904 = vpow2.f32 %v1586_v44  ;;  %v1295_v44 = vld [vmem:[%s2705_s26 + $0x60] sm:$0xff] }
 0x17c   : > { %v1881_v53 = vpop.eup %1880  ;;  %v1319_v57 = vadd.f32 %v1306_v36, %v1280_v26  ;;  %1906 = vpow2.f32 %v1580_v20 }
 0x17d   : > { %v1883_v62 = vpop.eup %1882  ;;  %1908 = vrcp.f32 %v1074_v51  ;;  %v1231_v55 = vadd.f32 1.0, %v1881_v53 }
 0x17e   : > { %v2954_v1 = vpop.eup %1884  ;;  %v1358_v42 = vadd.f32 %v1345_v14, %v1319_v57  ;;  %v1238_v63 = vadd.f32 1.0, %v1883_v62  ;;  %1910 = vpow2.f32 %v1587_v21 }
 0x17f   : > { %v1887_v10 = vpop.eup %1886  ;;  %1912 = vrcp.f32 %v1231_v55 }
 0x180   : > { %v1889_v56 = vpop.eup %1888  ;;  %1914 = vtanh.f32 %v2927_v0  ;;  %1410 = vst [vmem:[%s2739_s30 + $0x50] sm:$0xff] %v1358_v42  ;;  %v1281_v11 = vmul.f32 %v1887_v10, %v1879_v5 }
 0x181   : > { %v1891_v17 = vpop.eup %1890  ;;  %1916 = vrcp.f32 %v1238_v63  ;;  %v1346_v6 = vmul.f32 %v1889_v56, %v1333_v49 }
 0x182   : > { %v1893_v16 = vpop.eup %1892  ;;  %v1232_v19 = vadd.f32 1.0, %v1891_v17  ;;  %1918 = vpow2.f32 %v1581_v58 }
 0x183   : > { %v1895_v52 = vpop.eup %1894  ;;  %v1307_v30 = vmul.f32 %v1893_v16, %v1294_v46  ;;  %1920 = vpow2.f32 %v1588_v23 }
 0x184   : > { %v1897_v22 = vpop.eup %1896  ;;  %1922 = vrcp.f32 %v1232_v19  ;;  %v1239_v0 = vadd.f32 1.0, %v1895_v52 }
 0x185   : > { %v1899_v26 = vpop.eup %1898  ;;  %v1320_v7 = vadd.f32 %v1307_v30, %v1281_v11  ;;  %v1233_v2 = vadd.f32 1.0, %v1897_v22  ;;  %1924 = vpow2.f32 %v1582_v38 }
 0x186   : > { %v1901_v33 = vpop.eup %1900  ;;  %1926 = vrcp.f32 %v1239_v0 }
 0x187   : > { %v1903_v40 = vpop.eup %1902  ;;  %v1359_v8 = vadd.f32 %v1346_v6, %v1320_v7  ;;  %v1282_v13 = vmul.f32 %v1901_v33, %v1899_v26  ;;  %1928 = vrcp.f32 %v1233_v2 }
 0x188   : > { %v1905_v54 = vpop.eup %1904  ;;  %1930 = vpow2.f32 %v1589_v60  ;;  %v1347_v48 = vmul.f32 %v1903_v40, %v1334_v35 }
 0x189   : > { %v1907_v47 = vpop.eup %1906  ;;  %1932 = vtanh.f32 %v2942_v18  ;;  %1411 = vst [vmem:[%s2739_s30 + $0x58] sm:$0xff] %v1359_v8  ;;  %v1240_v59 = vadd.f32 1.0, %v1905_v54 }
 0x18a   : > { %v1909_v41 = vpop.eup %1908  ;;  %v1234_v20 = vadd.f32 1.0, %v1907_v47  ;;  %1934 = vpow2.f32 %v1583_v3 }
 0x18b   : > { %v1911_v39 = vpop.eup %1910  ;;  %v1308_v37 = vmul.f32 %v1909_v41, %v1295_v44  ;;  %1936 = vrcp.f32 %v1240_v59 }
 0x18c   : > { %v1913_v31 = vpop.eup %1912  ;;  %1938 = vrcp.f32 %v1234_v20  ;;  %v1241_v29 = vadd.f32 1.0, %v1911_v39 }
 0x18d   : > { %v1915_v18 = vpop.eup %1914  ;;  %1940 = vtanh.f32 %v1358_v42  ;;  %v1321_v14 = vadd.f32 %v1308_v37, %v1282_v13  ;;  %v1374_v36 = vmul.f32 %v1913_v31, %v2862_v27 }
 0x18e   : > { %v1917_v21 = vpop.eup %1916  ;;  %1942 = vrcp.f32 %v1241_v29 }
 0x18f   : > { %v1919_v5 = vpop.eup %1918  ;;  %v1360_v51 = vadd.f32 %v1347_v48, %v1321_v14  ;;  %1387 = vst [vmem:[%s2970_s10] sm:$0xff] %v1374_v36  ;;  %v1381_v9 = vmul.f32 %v1917_v21, %v2954_v1  ;;  %1944 = vtanh.f32 %v2824_v43 }
 0x190   : > { %v1921_v50 = vpop.eup %1920  ;;  %v1235_v53 = vadd.f32 1.0, %v1919_v5  ;;  %1946 = vtanh.f32 %v1359_v8 }
 0x191   : > { %v1923_v57 = vpop.eup %1922  ;;  %1412 = vst [vmem:[%s2739_s30 + $0x60] sm:$0xff] %v1360_v51  ;;  %1394 = vst [vmem:[%s2970_s10 + $0x38] sm:$0xff] %v1381_v9  ;;  %v1242_v28 = vadd.f32 1.0, %v1921_v50 }
 0x192   : > { %v1925_v62 = vpop.eup %1924  ;;  %v1375_v27 = vmul.f32 %v1923_v57, %v2868_v34  ;;  %1948 = vrcp.f32 %v1235_v53 }
 0x193   : > { %v1927_v55 = vpop.eup %1926  ;;  %1950 = vrcp.f32 %v1242_v28  ;;  %v1236_v58 = vadd.f32 1.0, %v1925_v62 }
 0x194   : > { %v1929_v4 = vpop.eup %1928  ;;  %1952 = vtanh.f32 %v2848_v61  ;;  %1388 = vst [vmem:[%s2970_s10 + $0x8] sm:$0xff] %v1375_v27  ;;  %v1382_v43 = vmul.f32 %v1927_v55, %v1915_v18 }
 0x195   : > { %v1931_v1 = vpop.eup %1930  ;;  %v1376_v42 = vmul.f32 %v1929_v4, %v2921_v32  ;;  %1954 = vrcp.f32 %v1236_v58 }
 0x196   : > { %v1933_v63 = vpop.eup %1932  ;;  %1395 = vst [vmem:[%s2970_s10 + $0x40] sm:$0xff] %v1382_v43  ;;  %v1243_v12 = vadd.f32 1.0, %v1931_v1  ;;  %1956 = vtanh.f32 %v1360_v51 }
 0x197   : > { %v1935_v34 = vpop.eup %1934  ;;  %1389 = vst [vmem:[%s2970_s10 + $0x10] sm:$0xff] %v1376_v42 }
 0x198   : > { %v1937_v10 = vpop.eup %1936  ;;  %1958 = vrcp.f32 %v1243_v12  ;;  %v1237_v23 = vadd.f32 1.0, %v1935_v34 }
 0x199   : > { %v1939_v56 = vpop.eup %1938  ;;  %1960 = vtanh.f32 %v2871_v45  ;;  %v1383_v61 = vmul.f32 %v1937_v10, %v1933_v63 }
 0x19a   : > { %v1941_v49 = vpop.eup %1940  ;;  %v1377_v32 = vmul.f32 %v1939_v56, %v2945_v25  ;;  %1962 = vrcp.f32 %v1237_v23 }
 0x19b   : > { %v1943_v11 = vpop.eup %1942  ;;  %1396 = vst [vmem:[%s2970_s10 + $0x48] sm:$0xff] %v1383_v61 }
 0x19c   : > { %1390 = vst [vmem:[%s2970_s10 + $0x18] sm:$0xff] %v1377_v32  ;;  %v1384_v46 = vmul.f32 %v1943_v11, %v1941_v49  ;;  %v1945_v15 = vpop.eup %1944 }
 0x19d   : > { %v1947_v17 = vpop.eup %1946 }
 0x19e   : > { %1397 = vst [vmem:[%s2970_s10 + $0x50] sm:$0xff] %v1384_v46 }
 0x19f   : > { %v1949_v38 = vpop.eup %1948 }
 0x1a0   : > { %v1951_v16 = vpop.eup %1950  ;;  %v1378_v45 = vmul.f32 %v1949_v38, %v1945_v15 }
 0x1a1   : > { %v1953_v19 = vpop.eup %1952  ;;  %v1385_v24 = vmul.f32 %v1951_v16, %v1947_v17 }
 0x1a2   : > { %v1955_v52 = vpop.eup %1954  ;;  %1391 = vst [vmem:[%s2970_s10 + $0x20] sm:$0xff] %v1378_v45 }
 0x1a3   : > { %1398 = vst [vmem:[%s2970_s10 + $0x58] sm:$0xff] %v1385_v24  ;;  %v1379_v25 = vmul.f32 %v1955_v52, %v1953_v19  ;;  %v1957_v6 = vpop.eup %1956 }
 0x1a5   : > { %v1959_v30 = vpop.eup %1958  ;;  %1392 = vst [vmem:[%s2970_s10 + $0x28] sm:$0xff] %v1379_v25 }
 0x1a6   : > { %v1961_v22 = vpop.eup %1960  ;;  %v1386_v0 = vmul.f32 %v1959_v30, %v1957_v6 }
 0x1a7   : > { %v1963_v60 = vpop.eup %1962 }
 0x1a8   : > { %1399 = vst [vmem:[%s2970_s10 + $0x60] sm:$0xff] %v1386_v0  ;;  %v1380_v26 = vmul.f32 %v1963_v60, %v1961_v22 }
 0x1aa   : > { %1393 = vst [vmem:[%s2970_s10 + $0x30] sm:$0xff] %v1380_v26 }
 0x1ab PF: > { %s17_s21 = sadd.s32 1, %s1970_s21  }
 0x1ac   : > { %p14_p4 = scmp.ge.s32.totalorder %s17_s21, 4  }
 0x1ae   :  { %16 = sbr.rel (!%p14_p4) target bundleno = 1 (0x1), region = 88 }

</bundles_post_ra>
